<compile_context>
chip_gen: v7x
topology: tpu7x:2x2x1
jax: 0.10.0
libtpu: 0.0.40
codegen_flags: <defaults>
</compile_context>

<pallas_src>
import jax
import jax.numpy as jnp
from jax.experimental import pallas as pl
from jax.experimental.pallas import tpu as pltpu


def _round_up(x, m):
    return ((x + m - 1) // m) * m


def studentnet_kernel(x_ref, w1_ref, b1_ref, w2_ref, b2_ref, w3_ref, b3_ref, o_ref):
    # x_ref: (tile_n, 3) raw points; weights/biases are full (un-tiled) resident blocks.
    x = x_ref[...]                      # (tile_n, 3)
    w1 = w1_ref[...]                    # (3, 128)

    # Layer 1 (in_features = 3): three broadcast FMAs on the VPU instead of a K=3
    # matmul — avoids any lane padding of the input.
    h1 = (x[:, 0:1] * w1[0:1, :]
          + x[:, 1:2] * w1[1:2, :]
          + x[:, 2:3] * w1[2:3, :]
          + b1_ref[...])
    h1 = jnp.maximum(h1, 0.0)                                          # ReLU

    # Layers 2 and 3 on the MXU with fp32 accumulation.
    h2 = jnp.dot(h1, w2_ref[...], preferred_element_type=jnp.float32) + b2_ref[...]
    h2 = jnp.maximum(h2, 0.0)                                          # ReLU
    out = jnp.dot(h2, w3_ref[...], preferred_element_type=jnp.float32) + b3_ref[...]
    o_ref[...] = out.astype(o_ref.dtype)


def prepare_params(params):
    """One-time parameter prep, hoisted out of the per-call forward.

    - biases reshaped to (1, dim) 2-D tiles,
    - W3 / b3 lane-padded so the output last dim is a multiple of 128
      (lane-dense output slab -> unmasked vector stores).
    Returns (packed_params, feature_dim).
    """
    w1, b1, w2, b2, w3, b3 = params
    feature_dim = w3.shape[1]
    f_pad = _round_up(feature_dim, 128)
    if f_pad != feature_dim:
        w3 = jnp.zeros((w3.shape[0], f_pad), w3.dtype).at[:, :feature_dim].set(w3)
        b3 = jnp.zeros((f_pad,), b3.dtype).at[:feature_dim].set(b3)
    packed = (w1, b1.reshape(1, -1), w2, b2.reshape(1, -1), w3, b3.reshape(1, -1))
    return packed, feature_dim


def studentnet_forward(pos, prepped, *, tile_n=512):
    """pos: (N, 3) float32. Returns (N, feature_dim) float32.

    Rows are padded with zeros up to a multiple of tile_n inside the wrapper;
    the padded rows produce valid-but-ignored outputs that are sliced away.
    """
    (w1, b1, w2, b2, w3, b3), feature_dim = prepped
    assert tile_n % 8 == 0, "tile_n must be a multiple of 8 (fp32 sublane tiling)"

    N = pos.shape[0]
    f_pad = w3.shape[1]
    n_pad = _round_up(max(N, 1), tile_n)
    if n_pad != N:
        pos = jnp.zeros((n_pad, 3), pos.dtype).at[:N, :].set(pos)

    grid = (n_pad // tile_n,)

    out = pl.pallas_call(
        studentnet_kernel,
        out_shape=jax.ShapeDtypeStruct((n_pad, f_pad), jnp.float32),
        grid_spec=pltpu.PrefetchScalarGridSpec(
            num_scalar_prefetch=0,
            grid=grid,
            in_specs=[
                pl.BlockSpec((tile_n, 3), lambda i: (i, 0)),       # raw points tile
                pl.BlockSpec((3, 128), lambda i: (0, 0)),          # W1 (resident)
                pl.BlockSpec((1, 128), lambda i: (0, 0)),          # b1
                pl.BlockSpec((128, 256), lambda i: (0, 0)),        # W2 (resident)
                pl.BlockSpec((1, 256), lambda i: (0, 0)),          # b2
                pl.BlockSpec((256, f_pad), lambda i: (0, 0)),      # W3 (resident, lane-padded)
                pl.BlockSpec((1, f_pad), lambda i: (0, 0)),        # b3
            ],
            out_specs=pl.BlockSpec((tile_n, f_pad), lambda i: (i, 0)),
        ),
        compiler_params=pltpu.CompilerParams(
            dimension_semantics=("parallel",),
        ),
    )(pos, w1, b1, w2, b2, w3, b3)

    return out[:N, :feature_dim]


def init_params(key, feature_dim):
    """Deterministic synthetic init; shapes match nn.Linear(3,128)/(128,256)/(256,feature_dim)."""
    k1, k2, k3, k4, k5, k6 = jax.random.split(key, 6)
    # stored as (in_features, out_features), i.e. x @ W + b  ==  torch's x @ W.T + b
    w1 = jax.random.normal(k1, (3, 128), jnp.float32) * (1.0 / jnp.sqrt(3.0))
    b1 = jax.random.normal(k2, (128,), jnp.float32) * 0.01
    w2 = jax.random.normal(k3, (128, 256), jnp.float32) * (1.0 / jnp.sqrt(128.0))
    b2 = jax.random.normal(k4, (256,), jnp.float32) * 0.01
    w3 = jax.random.normal(k5, (256, feature_dim), jnp.float32) * (1.0 / jnp.sqrt(256.0))
    b3 = jax.random.normal(k6, (feature_dim,), jnp.float32) * 0.01
    return (w1, b1, w2, b2, w3, b3)


def reference_forward(pos, params):
    w1, b1, w2, b2, w3, b3 = params
    h1 = jnp.maximum(pos @ w1 + b1, 0.0)
    h2 = jnp.maximum(h1 @ w2 + b2, 0.0)
    return h2 @ w3 + b3


if __name__ == "__main__":
    feature_dim = 128
    N = 2048           # number of points (data.pos has shape (N, 3))
    tile_n = 256       # -> grid of 8 steps: amortizes pipeline overhead, feeds both v7x TCs

    key = jax.random.PRNGKey(0)
    kx, kp = jax.random.split(key)
    pos = jax.random.normal(kx, (N, 3), jnp.float32)
    params = init_params(kp, feature_dim)

    prepped = prepare_params(params)             # one-time prep, hoisted out of forward
    out = studentnet_forward(pos, prepped, tile_n=tile_n)
    out = jax.block_until_ready(out)

    ref = reference_forward(pos, params)
    assert out.shape == (N, feature_dim)
    assert jnp.allclose(out, ref, atol=1e-4, rtol=1e-4)

    # Also exercise a non-multiple-of-tile_n row count (wrapper-side row padding path).
    out_small = studentnet_forward(pos[:100], prepped, tile_n=tile_n)
    out_small = jax.block_until_ready(out_small)
    assert out_small.shape == (100, feature_dim)
    assert jnp.allclose(out_small, ref[:100], atol=1e-4, rtol=1e-4)

    print("KERNEL_OK")
</pallas_src>

<mosaic_0001>
module attributes {stable_mosaic.version = 11 : i64} {
  func.func @studentnet_kernel(%arg0: i32, %arg1: memref<256x3xf32, #tpu.memory_space<vmem>>, %arg2: memref<3x128xf32, #tpu.memory_space<vmem>>, %arg3: memref<1x128xf32, #tpu.memory_space<vmem>>, %arg4: memref<128x256xf32, #tpu.memory_space<vmem>>, %arg5: memref<1x256xf32, #tpu.memory_space<vmem>>, %arg6: memref<256x128xf32, #tpu.memory_space<vmem>>, %arg7: memref<1x128xf32, #tpu.memory_space<vmem>>, %arg8: memref<256x128xf32, #tpu.memory_space<vmem>>) attributes {dimension_semantics = [#tpu.dimension_semantics<parallel>], iteration_bounds = array<i64: 8>, scalar_prefetch = 0 : i64, scratch_operands = 0 : i64, tpu.core_type = #tpu.core_type<tc>, window_params = [{transform_indices = @transform_0, window_bounds = array<i64: 256, 3>}, {pipeline_mode = #tpu.pipeline_mode<synchronous>, transform_indices = @transform_1, window_bounds = array<i64: 3, 128>}, {pipeline_mode = #tpu.pipeline_mode<synchronous>, transform_indices = @transform_2, window_bounds = array<i64: 1, 128>}, {pipeline_mode = #tpu.pipeline_mode<synchronous>, transform_indices = @transform_3, window_bounds = array<i64: 128, 256>}, {pipeline_mode = #tpu.pipeline_mode<synchronous>, transform_indices = @transform_4, window_bounds = array<i64: 1, 256>}, {pipeline_mode = #tpu.pipeline_mode<synchronous>, transform_indices = @transform_5, window_bounds = array<i64: 256, 128>}, {pipeline_mode = #tpu.pipeline_mode<synchronous>, transform_indices = @transform_6, window_bounds = array<i64: 1, 128>}, {transform_indices = @transform_7, window_bounds = array<i64: 256, 128>}]} {
    %c0 = arith.constant 0 : index
    %c0_0 = arith.constant 0 : index
    %0 = vector.load %arg1[%c0, %c0_0] : memref<256x3xf32, #tpu.memory_space<vmem>>, vector<256x3xf32>
    %c0_1 = arith.constant 0 : index
    %c0_2 = arith.constant 0 : index
    %1 = vector.load %arg2[%c0_1, %c0_2] : memref<3x128xf32, #tpu.memory_space<vmem>>, vector<3x128xf32>
    %2 = vector.extract_strided_slice %0 {offsets = [0, 0], sizes = [256, 1], strides = [1, 1]} : vector<256x3xf32> to vector<256x1xf32>
    %3 = vector.extract_strided_slice %1 {offsets = [0, 0], sizes = [1, 128], strides = [1, 1]} : vector<3x128xf32> to vector<1x128xf32>
    %4 = vector.broadcast %2 : vector<256x1xf32> to vector<256x128xf32>
    %5 = vector.broadcast %3 : vector<1x128xf32> to vector<256x128xf32>
    %6 = arith.mulf %4, %5 : vector<256x128xf32>
    %7 = vector.extract_strided_slice %0 {offsets = [0, 1], sizes = [256, 1], strides = [1, 1]} : vector<256x3xf32> to vector<256x1xf32>
    %8 = vector.extract_strided_slice %1 {offsets = [1, 0], sizes = [1, 128], strides = [1, 1]} : vector<3x128xf32> to vector<1x128xf32>
    %9 = vector.broadcast %7 : vector<256x1xf32> to vector<256x128xf32>
    %10 = vector.broadcast %8 : vector<1x128xf32> to vector<256x128xf32>
    %11 = arith.mulf %9, %10 : vector<256x128xf32>
    %12 = arith.addf %6, %11 : vector<256x128xf32>
    %13 = vector.extract_strided_slice %0 {offsets = [0, 2], sizes = [256, 1], strides = [1, 1]} : vector<256x3xf32> to vector<256x1xf32>
    %14 = vector.extract_strided_slice %1 {offsets = [2, 0], sizes = [1, 128], strides = [1, 1]} : vector<3x128xf32> to vector<1x128xf32>
    %15 = vector.broadcast %13 : vector<256x1xf32> to vector<256x128xf32>
    %16 = vector.broadcast %14 : vector<1x128xf32> to vector<256x128xf32>
    %17 = arith.mulf %15, %16 : vector<256x128xf32>
    %18 = arith.addf %12, %17 : vector<256x128xf32>
    %c0_3 = arith.constant 0 : index
    %c0_4 = arith.constant 0 : index
    %19 = vector.load %arg3[%c0_3, %c0_4] : memref<1x128xf32, #tpu.memory_space<vmem>>, vector<1x128xf32>
    %20 = vector.broadcast %19 : vector<1x128xf32> to vector<256x128xf32>
    %21 = arith.addf %18, %20 : vector<256x128xf32>
    %cst = arith.constant 0.000000e+00 : f32
    %22 = vector.broadcast %cst : f32 to vector<256x128xf32>
    %23 = arith.maximumf %21, %22 : vector<256x128xf32>
    %c0_5 = arith.constant 0 : index
    %c0_6 = arith.constant 0 : index
    %24 = vector.load %arg4[%c0_5, %c0_6] : memref<128x256xf32, #tpu.memory_space<vmem>>, vector<128x256xf32>
    %cst_7 = arith.constant dense<0.000000e+00> : vector<256x256xf32>
    %25 = tpu.matmul %23, %24, %cst_7 {dimension_numbers = #tpu.dot_dimension_numbers<[1], [0], [0], [1], [0, 0, 1, 1], [], []>} : vector<256x128xf32>, vector<128x256xf32>, vector<256x256xf32> -> vector<256x256xf32>
    %c0_8 = arith.constant 0 : index
    %c0_9 = arith.constant 0 : index
    %26 = vector.load %arg5[%c0_8, %c0_9] : memref<1x256xf32, #tpu.memory_space<vmem>>, vector<1x256xf32>
    %27 = vector.broadcast %26 : vector<1x256xf32> to vector<256x256xf32>
    %28 = arith.addf %25, %27 : vector<256x256xf32>
    %cst_10 = arith.constant 0.000000e+00 : f32
    %29 = vector.broadcast %cst_10 : f32 to vector<256x256xf32>
    %30 = arith.maximumf %28, %29 : vector<256x256xf32>
    %c0_11 = arith.constant 0 : index
    %c0_12 = arith.constant 0 : index
    %31 = vector.load %arg6[%c0_11, %c0_12] : memref<256x128xf32, #tpu.memory_space<vmem>>, vector<256x128xf32>
    %cst_13 = arith.constant dense<0.000000e+00> : vector<256x128xf32>
    %32 = tpu.matmul %30, %31, %cst_13 {dimension_numbers = #tpu.dot_dimension_numbers<[1], [0], [0], [1], [0, 0, 1, 1], [], []>} : vector<256x256xf32>, vector<256x128xf32>, vector<256x128xf32> -> vector<256x128xf32>
    %c0_14 = arith.constant 0 : index
    %c0_15 = arith.constant 0 : index
    %33 = vector.load %arg7[%c0_14, %c0_15] : memref<1x128xf32, #tpu.memory_space<vmem>>, vector<1x128xf32>
    %34 = vector.broadcast %33 : vector<1x128xf32> to vector<256x128xf32>
    %35 = arith.addf %32, %34 : vector<256x128xf32>
    %c0_16 = arith.constant 0 : index
    %c0_17 = arith.constant 0 : index
    %36 = vector.load %arg8[%c0_16, %c0_17] : memref<256x128xf32, #tpu.memory_space<vmem>>, vector<256x128xf32>
    tpu.vector_store %arg8[%c0_16, %c0_17], %35 {strides = array<i32>} : memref<256x128xf32, #tpu.memory_space<vmem>>, vector<256x128xf32>,
    return
  }
  func.func @transform_0(%arg0: i32) -> (i32, i32) {
    %c0_i32 = arith.constant 0 : i32
    %c0_i32_0 = arith.constant 0 : i32
    return %arg0, %c0_i32 : i32, i32
  }
  func.func @transform_1(%arg0: i32) -> (i32, i32) {
    %c0_i32 = arith.constant 0 : i32
    %c0_i32_0 = arith.constant 0 : i32
    %c0_i32_1 = arith.constant 0 : i32
    return %c0_i32, %c0_i32_0 : i32, i32
  }
  func.func @transform_2(%arg0: i32) -> (i32, i32) {
    %c0_i32 = arith.constant 0 : i32
    %c0_i32_0 = arith.constant 0 : i32
    %c0_i32_1 = arith.constant 0 : i32
    return %c0_i32, %c0_i32_0 : i32, i32
  }
  func.func @transform_3(%arg0: i32) -> (i32, i32) {
    %c0_i32 = arith.constant 0 : i32
    %c0_i32_0 = arith.constant 0 : i32
    %c0_i32_1 = arith.constant 0 : i32
    return %c0_i32, %c0_i32_0 : i32, i32
  }
  func.func @transform_4(%arg0: i32) -> (i32, i32) {
    %c0_i32 = arith.constant 0 : i32
    %c0_i32_0 = arith.constant 0 : i32
    %c0_i32_1 = arith.constant 0 : i32
    return %c0_i32, %c0_i32_0 : i32, i32
  }
  func.func @transform_5(%arg0: i32) -> (i32, i32) {
    %c0_i32 = arith.constant 0 : i32
    %c0_i32_0 = arith.constant 0 : i32
    %c0_i32_1 = arith.constant 0 : i32
    return %c0_i32, %c0_i32_0 : i32, i32
  }
  func.func @transform_6(%arg0: i32) -> (i32, i32) {
    %c0_i32 = arith.constant 0 : i32
    %c0_i32_0 = arith.constant 0 : i32
    %c0_i32_1 = arith.constant 0 : i32
    return %c0_i32, %c0_i32_0 : i32, i32
  }
  func.func @transform_7(%arg0: i32) -> (i32, i32) {
    %c0_i32 = arith.constant 0 : i32
    %c0_i32_0 = arith.constant 0 : i32
    return %arg0, %c0_i32 : i32, i32
  }
}

</mosaic_0001>

<bundles_post_ra>
// kernel: tpu_custom_call.1
= control target key start
LH: loop header
LB: loop body
LE: loop exit
PB: predicated region body
PF: predicated region fallthrough
CT: control target
= control target key end

     0   :  { %12 = vsyncpa [#allocation3], 0  ;;  %s2992_s0 = inlined_call_operand.vmem [shape: f32[2048,3], index: 0, kind: input, shape index: {}]   ;;  %s2993_s1 = inlined_call_operand.vmem [shape: f32[3,128], index: 1, kind: input, shape index: {}]   ;;  %s2994_s2 = inlined_call_operand.vmem [shape: f32[1,128], index: 2, kind: input, shape index: {}]   ;;  %s2995_s3 = inlined_call_operand.vmem [shape: f32[128,256], index: 3, kind: input, shape index: {}]   ;;  %s2996_s4 = inlined_call_operand.vmem [shape: f32[1,256], index: 4, kind: input, shape index: {}]   ;;  %s2997_s5 = inlined_call_operand.vmem [shape: f32[256,128], index: 5, kind: input, shape index: {}]   ;;  %s2998_s6 = inlined_call_operand.vmem [shape: f32[1,128], index: 6, kind: input, shape index: {}]   ;;  %s2999_s7 = inlined_call_operand.hbm [shape: f32[2048,128], index: 7, kind: output, shape index: {}]  }
   0x1   :  { %14 = vsyncpa [#allocation3 + $0x1], 0  ;;  %s2062_s24 = smov 0   ;;  %s2064_s25 = smov 0  }
   0x2   :  { %s2066_s26 = smov 0   ;;  %s2068_s27 = smov 0  }
   0x3 LB: > { %s2083_s28 = sadd.s32 4294967295, %s2012_s27   ;;  %s1709_s29 = sadd.s32 4294967294, %s2012_s27   ;;  %s2012_s27 = sphi %s2068_s27, %s3005_s27   ;;  %s2008_s26 = sphi %s2066_s26, %s3004_s26   ;;  %s2004_s25 = sphi %s2064_s25, %s3003_s25   ;;  %s2000_s24 = sphi %s2062_s24, %s3002_s24  }
   0x4   : > { %s2087_s30 = sadd.s32 1, %s2012_s27   ;;  %s179_s8 = sadd.s32 1, %s2008_s26 }
   0x5   : > { %s176_s9 = ssub.s32 %s2012_s27, %s2087_s30  ;;  %p189_p0 = scmp.ne.s32.totalorder %s2008_s26, %s2004_s25 }
   0x6   : > { %p177_p1 = scmp.eq.s32.totalorder %s176_s9, 0  ;;  %p190_p2 = scmp.eq.s32.totalorder %s2083_s28, 7 }
   0x7   : > { %p195_p3 = scmp.ne.s32.totalorder %s2004_s25, %s2000_s24  ;;  %p196_p4 = scmp.eq.s32.totalorder %s1709_s29, 7 }
   0x8   : > { %s2098_s10 = scalar_select %p177_p1, %s2008_s26, %s179_s8  }
   0x9   : > { %p2100_p5 = por %p190_p2, %p189_p0  ;;  %p2104_p6 = por %p196_p4, %p195_p3 }
   0xa   : > { %p1712_p7 = scmp.ge.s32.totalorder %s2012_s27, 1  ;;  %p241_p8 = scmp.lt.s32.totalorder %s2012_s27, 9 }
   0xc   : > { %p242_p9 = pnand %p1712_p7, %p241_p8 }
   0xd   : > { %s1714_s13 = sshll.u32 (!%p242_p9), %s2083_s28, 5  ;;  %v973_v0 = vld [vmem:[%s2995_s3 + $0x8] sm:$0xff] (!%p242_p9)  ;;  %v975_v1 = vld [vmem:[%s2995_s3 + $0x18] sm:$0xff] (!%p242_p9)  ;;  %v2014_v2 = vmov (!%p242_p9), 2   ;;  %v2015_v3 = vmov (!%p242_p9), 0   ;;  %v972_v5 = vld [vmem:[%s2995_s3] sm:$0xff] (!%p242_p9) }
   0xe   : > { %245 = sbr.rel (%p242_p9) target bundleno = 890 (0x37a), region = 48  ;;  %1884 = vset.pattern.permute.xlu1 (!%p242_p9), %v2014_v2  ;;  %1882 = vset.pattern.permute.xlu0 (!%p242_p9), %v2015_v3  ;;  %p274_p10 = scmp.lt.s32.totalorder (!%p242_p9), %s1714_s13, 255  ;;  %v1724_v4 = vpack.c.bf16 (!%p242_p9), %v975_v1, %v973_v0  ;;  %v974_v6 = vld [vmem:[%s2995_s3 + $0x10] sm:$0xff] (!%p242_p9)  ;;  %v977_v7 = vld [vmem:[%s2995_s3 + $0x28] sm:$0xff] (!%p242_p9)  ;;  %v979_v9 = vld [vmem:[%s2995_s3 + $0x38] sm:$0xff] (!%p242_p9)  ;;  %v2016_v25 = vmov (!%p242_p9), 1  }
   0xf   : > { %v1726_v8 = vpack.c.bf16 (!%p242_p9), %v974_v6, %v972_v5  ;;  %v976_v10 = vld [vmem:[%s2995_s3 + $0x20] sm:$0xff] (!%p242_p9)  ;;  %v978_v11 = vld [vmem:[%s2995_s3 + $0x30] sm:$0xff] (!%p242_p9)  ;;  %v1728_v12 = vpack.c.bf16 (!%p242_p9), %v979_v9, %v977_v7  ;;  %v981_v13 = vld [vmem:[%s2995_s3 + $0x48] sm:$0xff] (!%p242_p9)  ;;  %v2017_v45 = vmov (!%p242_p9), 0.0   ;;  %s270_s18 = sand.u32 (!%p242_p9), 1, %s2004_s25   ;;  %s1723_s22 = sshll.u32 (!%p242_p9), %s2083_s28, 12 }
  0x10   : > { %1725 = vmatprep.subr.bf16.mxu0 (!%p242_p9), %v1724_v4  ;;  %v983_v14 = vld [vmem:[%s2995_s3 + $0x58] sm:$0xff] (!%p242_p9)  ;;  %v1730_v15 = vpack.c.bf16 (!%p242_p9), %v978_v11, %v976_v10  ;;  %v980_v18 = vld [vmem:[%s2995_s3 + $0x40] sm:$0xff] (!%p242_p9)  ;;  %v982_v19 = vld [vmem:[%s2995_s3 + $0x50] sm:$0xff] (!%p242_p9)  ;;  %1080 = vmatprep.mubr.f32.mxu0 (!%p242_p9), %v2017_v45  ;;  %s1713_s19 = sshll.u32 (!%p242_p9), %s270_s18, 8  ;;  %s2943_s14 = scalar_lea.hbm (!%p242_p9), %s2999_s7, %s1723_s22 }
  0x11   : > { %1727 = vmatpush1.bf16.msra.mxu0 (!%p242_p9), %v1726_v8  ;;  %v1732_v16 = vpack.c.bf16 (!%p242_p9), %v983_v14, %v981_v13  ;;  %v985_v20 = vld [vmem:[%s2995_s3 + $0x68] sm:$0xff] (!%p242_p9)  ;;  %v987_v21 = vld [vmem:[%s2995_s3 + $0x78] sm:$0xff] (!%p242_p9)  ;;  %v1734_v23 = vpack.c.bf16 (!%p242_p9), %v982_v19, %v980_v18  ;;  %v984_v26 = vld [vmem:[%s2995_s3 + $0x60] sm:$0xff] (!%p242_p9)  ;;  %s2951_s15 = scalar_lea.sflag (!%p242_p9), [#allocation3], %s270_s18 }
  0x12   : > { %1729 = vmatprep.subr.bf16.mxu0 (!%p242_p9), %v1728_v12  ;;  %v1736_v24 = vpack.c.bf16 (!%p242_p9), %v987_v21, %v985_v20  ;;  %v986_v27 = vld [vmem:[%s2995_s3 + $0x70] sm:$0xff] (!%p242_p9)  ;;  %v989_v28 = vld [vmem:[%s2995_s3 + $0x88] sm:$0xff] (!%p242_p9)  ;;  %v991_v29 = vld [vmem:[%s2995_s3 + $0x98] sm:$0xff] (!%p242_p9) }
  0x13   : > { %v1738_v31 = vpack.c.bf16 (!%p242_p9), %v986_v27, %v984_v26  ;;  %v1740_v32 = vpack.c.bf16 (!%p242_p9), %v991_v29, %v989_v28  ;;  %v988_v33 = vld [vmem:[%s2995_s3 + $0x80] sm:$0xff] (!%p242_p9)  ;;  %v990_v34 = vld [vmem:[%s2995_s3 + $0x90] sm:$0xff] (!%p242_p9)  ;;  %v993_v35 = vld [vmem:[%s2995_s3 + $0xa8] sm:$0xff] (!%p242_p9) }
  0x14   : > { %v995_v36 = vld [vmem:[%s2995_s3 + $0xb8] sm:$0xff] (!%p242_p9)  ;;  %v1742_v38 = vpack.c.bf16 (!%p242_p9), %v990_v34, %v988_v33  ;;  %v992_v41 = vld [vmem:[%s2995_s3 + $0xa0] sm:$0xff] (!%p242_p9)  ;;  %v994_v42 = vld [vmem:[%s2995_s3 + $0xb0] sm:$0xff] (!%p242_p9) }
  0x15   : > { %s3007_s13 = smov (!%p274_p10, %s1714_s13), 255  ;;  %1731 = vmatpush1.bf16.msra.mxu0 %v1730_v15  ;;  %v1744_v40 = vpack.c.bf16 %v995_v36, %v993_v35  ;;  %v997_v43 = vld [vmem:[%s2995_s3 + $0xc8] sm:$0xff]  ;;  %v999_v44 = vld [vmem:[%s2995_s3 + $0xd8] sm:$0xff]  ;;  %v1746_v47 = vpack.c.bf16 %v994_v42, %v992_v41  ;;  %v996_v49 = vld [vmem:[%s2995_s3 + $0xc0] sm:$0xff]  ;;  %v473_v15 = vlaneseq }
  0x16   : > { %s1715_s21 = sshll.u32 %s3007_s13, 3  ;;  %1733 = vmatprep.subr.bf16.mxu0 %v1732_v16  ;;  %v1748_v48 = vpack.c.bf16 %v999_v44, %v997_v43  ;;  %v998_v50 = vld [vmem:[%s2995_s3 + $0xd0] sm:$0xff]  ;;  %v1001_v51 = vld [vmem:[%s2995_s3 + $0xe8] sm:$0xff]  ;;  %v1003_v52 = vld [vmem:[%s2995_s3 + $0xf8] sm:$0xff]  ;;  %s2019_s13 = smov [#allocation2]  }
  0x17   : > { %s2146_s29 = scalar_lea.vmem %s2992_s0, %s1715_s21  ;;  %v1750_v54 = vpack.c.bf16 %v998_v50, %v996_v49  ;;  %v1752_v55 = vpack.c.bf16 %v1003_v52, %v1001_v51  ;;  %v1000_v56 = vld [vmem:[%s2995_s3 + $0xe0] sm:$0xff]  ;;  %v1002_v57 = vld [vmem:[%s2995_s3 + $0xf0] sm:$0xff]  ;;  %s2875_s21 = scalar_lea.vmem [#allocation2], %s1713_s19 }
  0x18   : > { %v280_v17 = vld [vmem:[%s2146_s29] sm:$0xff]  ;;  %v2162_v22 = vld [vmem:[%s2146_s29 + $0x8] sm:$0xff]  ;;  %v2199_v37 = vld [vmem:[%s2146_s29 + $0x30] sm:$0xff]  ;;  %v1754_v59 = vpack.c.bf16 %v1002_v57, %v1000_v56  ;;  %s1647_s23 = sshll.u32 %s2875_s21, 4  ;;  %s1954_s16 = sshll.u32 %s2019_s13, 4  ;;  %s2945_s23 = int_to_ptr.vmem [resolvable:$true] %s1647_s23  ;;  %s1955_s16 = int_to_ptr.vmem [resolvable:$false] %s1954_s16 }
  0x19   : > { %706 = vperm.xlu1 %1884, %v280_v17   ;;  %315 = vperm.xlu0 %1882, %v280_v17   ;;  %v2180_v30 = vld [vmem:[%s2146_s29 + $0x28] sm:$0xff]  ;;  %v282_v39 = vld [vmem:[%s2146_s29 + $0x10] sm:$0xff]  ;;  %v2235_v53 = vld [vmem:[%s2146_s29 + $0x58] sm:$0xff]  ;;  %s1950_s28 = scalar_lea.vmem %s2945_s23, 4096  ;;  %s1956_s17 = scalar_lea.vmem %s1955_s16, 8192 }
  0x1a   : > { %1735 = vmatpush1.bf16.msra.mxu0 %v1734_v23  ;;  %v2218_v46 = vld [vmem:[%s2146_s29 + $0x50] sm:$0xff]  ;;  %v283_v58 = vld [vmem:[%s2146_s29 + $0x18] sm:$0xff]  ;;  %v284_v60 = vld [vmem:[%s2146_s29 + $0x20] sm:$0xff]  ;;  %p1951_p11 = scmp.ne.s32.totalorder %s2945_s23, %s1950_s28  ;;  %p1957_p0 = scmp.lt.s32.totalorder %s2945_s23, %s1955_s16 }
  0x1b   : > { %1737 = vmatprep.subr.bf16.mxu0 %v1736_v24  ;;  %v287_v61 = vld [vmem:[%s2146_s29 + $0x38] sm:$0xff]  ;;  %v292_v62 = vld [vmem:[%s2146_s29 + $0x60] sm:$0xff]  ;;  %v2265_v0 = vld [vmem:[%s2146_s29 + $0x88] sm:$0xff]  ;;  %p1958_p1 = scmp.lt.s32.totalorder %s1956_s17, %s1950_s28 }
  0x1c   : > { %v2259_v63 = vld [vmem:[%s2146_s29 + $0x80] sm:$0xff]  ;;  %v289_v4 = vld [vmem:[%s2146_s29 + $0x48] sm:$0xff]  ;;  %v294_v6 = vld [vmem:[%s2146_s29 + $0x70] sm:$0xff]  ;;  %p1952_p12 = pnand %p1951_p11, %p2100_p5 }
  0x1d   : > { %1885 = vset.pattern.permute.xlu1 %v2015_v3  ;;  %1883 = vset.pattern.permute.xlu0 %v2016_v25  ;;  %v288_v1 = vld [vmem:[%s2146_s29 + $0x40] sm:$0xff]  ;;  %v293_v5 = vld [vmem:[%s2146_s29 + $0x68] sm:$0xff]  ;;  %v2281_v7 = vld [vmem:[%s2146_s29 + $0x90] sm:$0xff]  ;;  %p1959_p2 = por %p1958_p1, %p1957_p0 }
  0x1e   : > { %320 = vperm.xlu1 %1885, %v2162_v22   ;;  %510 = vperm.xlu0 %1883, %v280_v17   ;;  %v2286_v8 = vld [vmem:[%s2146_s29 + $0x98] sm:$0xff]  ;;  %v2296_v10 = vld [vmem:[%s2146_s29 + $0xc0] sm:$0xff]  ;;  %v2313_v13 = vld [vmem:[%s2146_s29 + $0xa8] sm:$0xff]  ;;  %v2325_v17 = vshrl.u32 %v473_v15, 7  ;;  %p1953_p13 = pneg %p1952_p12 }
  0x1f   : > { %1739 = vmatpush1.bf16.msra.mxu0 %v1738_v31  ;;  %v2291_v9 = vld [vmem:[%s2146_s29 + $0xb8] sm:$0xff]  ;;  %v2308_v12 = vld [vmem:[%s2146_s29 + $0xa0] sm:$0xff]  ;;  %v2318_v14 = vld [vmem:[%s2146_s29 + $0xc8] sm:$0xff] }
  0x20   : > { %1741 = vmatprep.subr.bf16.mxu0 %v1740_v32  ;;  %v295_v11 = vld [vmem:[%s2146_s29 + $0x78] sm:$0xff]  ;;  %v2322_v16 = vld [vmem:[%s2146_s29 + $0xd0] sm:$0xff]  ;;  %v475_v18 = vsub.s32 0, %v2325_v17  ;;  %v639_v19 = vsub.s32 1, %v2325_v17  ;;  %v312_v20 = vld [vmem:[%s2993_s1] sm:$0x7]  ;;  %p1960_p3 = pnand %p1959_p2, %p1953_p13 }
  0x21   : > { %v835_v21 = vsub.s32 2, %v2325_v17  ;;  %v2347_v27 = vld [vmem:[%s2146_s29 + $0xb0] sm:$0xff]  ;;  %v2360_v35 = vld [vmem:[%s2994_s2] ss:$0 sm:$0xff] }
  0x22   : > { %1886 = vset.pattern.permute.xlu1 %v2016_v25  ;;  %1893 = vset.pattern.permute.xlu0 %v2015_v3  ;;  %v2339_v23 = vrot.slane %v312_v20, %v475_v18  ;;  %v2344_v26 = vrot.slane %v312_v20, %v639_v19  ;;  %v2371_v41 = vld [vmem:[%s2146_s29 + $0xe0] sm:$0xff]  ;;  %v2390_v50 = vld [vmem:[%s2146_s29 + $0xf0] sm:$0xff] }
  0x23   : > { %514 = vperm.xlu1 %1886, %v2162_v22   ;;  %340 = vperm.xlu0 %1893, %v2180_v30   ;;  %v2350_v28 = vrot.slane %v312_v20, %v835_v21 }
  0x24   : > { %1743 = vmatpush1.bf16.msra.mxu0 %v1742_v38 }
  0x25   : > { %1745 = vmatprep.subr.bf16.mxu0 %v1744_v40 }
  0x27   : > { %1887 = vset.pattern.permute.xlu1 %v2015_v3  ;;  %345 = vperm.xlu0 %1893, %v2199_v37  }
  0x28   : > { %325 = vperm.xlu1 %1887, %v282_v39   ;;  %1747 = vmatpush1.bf16.msra.mxu0 %v1746_v47 }
  0x29   : > { %1749 = vmatprep.subr.bf16.mxu0 %v1748_v48 }
  0x2b   : > { %365 = vperm.xlu0 %1893, %v2218_v46  }
  0x2c   : > { %1888 = vset.pattern.permute.xlu1 %v2016_v25  ;;  %1751 = vmatpush1.bf16.msra.mxu0 %v1750_v54  ;;  %v2398_v54 = vld [vmem:[%s2146_s29 + $0xf8] sm:$0xff] }
  0x2d   : > { %518 = vperm.xlu1 %1888, %v282_v39   ;;  %1753 = vmatprep.subr.bf16.mxu0 %v1752_v55 }
  0x2f   : > { %370 = vperm.xlu0 %1893, %v2235_v53  }
  0x30   : > { %1755 = vmatpush1.bf16.msra.mxu0 %v1754_v59 }
  0x31   : > { %1889 = vset.pattern.permute.xlu1 %v2015_v3 }
  0x32   : > { %330 = vperm.xlu1 %1889, %v283_v58  }
  0x33   : > { %1905 = vset.pattern.permute.xlu0 %v2014_v2 }
  0x34   : > { %710 = vperm.xlu0 %1905, %v2162_v22  }
  0x36   : > { %1890 = vset.pattern.permute.xlu1 %v2014_v2 }
  0x37   : > { %718 = vperm.xlu1 %1890, %v283_v58  }
  0x38   : > { %714 = vperm.xlu0 %1905, %v282_v39   ;;  %v2365_v39 = vld [vmem:[%s2146_s29 + $0xd8] sm:$0xff] }
  0x3b   : > { %1891 = vset.pattern.permute.xlu1 %v2015_v3 }
  0x3c   : > { %335 = vperm.xlu1 %1891, %v284_v60   ;;  %730 = vperm.xlu0 %1905, %v2199_v37  }
  0x40   : > { %1892 = vset.pattern.permute.xlu1 %v2014_v2  ;;  %734 = vperm.xlu0 %1905, %v287_v61  }
  0x41   : > { %722 = vperm.xlu1 %1892, %v284_v60  }
  0x44   : > { %750 = vperm.xlu0 %1905, %v2235_v53  }
  0x45   : > { %1894 = vset.pattern.permute.xlu1 %v2016_v25 }
  0x46   : > { %530 = vperm.xlu1 %1894, %v2180_v30  }
  0x48   : > { %754 = vperm.xlu0 %1905, %v292_v62  }
  0x4a   : > { %1895 = vset.pattern.permute.xlu1 %v2014_v2 }
  0x4b   : > { %726 = vperm.xlu1 %1895, %v2180_v30  }
  0x4c   : > { %770 = vperm.xlu0 %1905, %v2259_v63  }
  0x4f   : > { %1896 = vset.pattern.permute.xlu1 %v2016_v25 }
  0x50   : > { %534 = vperm.xlu1 %1896, %v2199_v37   ;;  %774 = vperm.xlu0 %1905, %v2265_v0  }
  0x54   : > { %1897 = vset.pattern.permute.xlu1 %v2015_v3  ;;  %1918 = vset.pattern.permute.xlu0 %v2016_v25 }
  0x55   : > { %350 = vperm.xlu1 %1897, %v287_v61   ;;  %522 = vperm.xlu0 %1918, %v283_v58  }
  0x59   : > { %1898 = vset.pattern.permute.xlu1 %v2016_v25  ;;  %526 = vperm.xlu0 %1918, %v284_v60  }
  0x5a   : > { %538 = vperm.xlu1 %1898, %v287_v61  }
  0x5d   : > { %542 = vperm.xlu0 %1918, %v288_v1  }
  0x5e   : > { %1899 = vset.pattern.permute.xlu1 %v2015_v3 }
  0x5f   : > { %355 = vperm.xlu1 %1899, %v288_v1  }
  0x61   : > { %546 = vperm.xlu0 %1918, %v289_v4  }
  0x63   : > { %1900 = vset.pattern.permute.xlu1 %v2014_v2 }
  0x64   : > { %738 = vperm.xlu1 %1900, %v288_v1  }
  0x65   : > { %562 = vperm.xlu0 %1918, %v293_v5  }
  0x68   : > { %1901 = vset.pattern.permute.xlu1 %v2015_v3 }
  0x69   : > { %360 = vperm.xlu1 %1901, %v289_v4   ;;  %566 = vperm.xlu0 %1918, %v294_v6  }
  0x6d   : > { %1902 = vset.pattern.permute.xlu1 %v2014_v2  ;;  %582 = vperm.xlu0 %1918, %v2281_v7  }
  0x6e   : > { %742 = vperm.xlu1 %1902, %v289_v4  }
  0x71   : > { %586 = vperm.xlu0 %1918, %v2286_v8  }
  0x72   : > { %1903 = vset.pattern.permute.xlu1 %v2016_v25 }
  0x73   : > { %550 = vperm.xlu1 %1903, %v2218_v46  }
  0x75   : > { %602 = vperm.xlu0 %1918, %v2291_v9  }
  0x77   : > { %1904 = vset.pattern.permute.xlu1 %v2014_v2 }
  0x78   : > { %746 = vperm.xlu1 %1904, %v2218_v46   ;;  %v2380_v46 = vld [vmem:[%s2146_s29 + $0xe8] sm:$0xff] }
  0x79   : > { %606 = vperm.xlu0 %1918, %v2296_v10  }
  0x7c   : > { %1906 = vset.pattern.permute.xlu1 %v2016_v25 }
  0x7d   : > { %554 = vperm.xlu1 %1906, %v2235_v53   ;;  %1931 = vset.pattern.permute.xlu0 %v2015_v3 }
  0x7e   : > { %390 = vperm.xlu0 %1931, %v295_v11  }
  0x81   : > { %1907 = vset.pattern.permute.xlu1 %v2015_v3 }
  0x82   : > { %375 = vperm.xlu1 %1907, %v292_v62   ;;  %395 = vperm.xlu0 %1931, %v2259_v63  }
  0x86   : > { %1908 = vset.pattern.permute.xlu1 %v2016_v25  ;;  %415 = vperm.xlu0 %1931, %v2308_v12  }
  0x87   : > { %558 = vperm.xlu1 %1908, %v292_v62  }
  0x8a   : > { %420 = vperm.xlu0 %1931, %v2313_v13  }
  0x8b   : > { %1909 = vset.pattern.permute.xlu1 %v2015_v3 }
  0x8c   : > { %380 = vperm.xlu1 %1909, %v293_v5  }
  0x8e   : > { %440 = vperm.xlu0 %1931, %v2318_v14  }
  0x90   : > { %1910 = vset.pattern.permute.xlu1 %v2014_v2 }
  0x91   : > { %758 = vperm.xlu1 %1910, %v293_v5  }
  0x92   : > { %445 = vperm.xlu0 %1931, %v2322_v16  }
  0x95   : > { %1911 = vset.pattern.permute.xlu1 %v2015_v3 }
  0x96   : > { %385 = vperm.xlu1 %1911, %v294_v6   ;;  %1935 = vset.pattern.permute.xlu0 %v2014_v2 }
  0x97   : > { %790 = vperm.xlu0 %1935, %v2313_v13  }
  0x98   : > { %v707_v22 = vpop.permute.xlu1 %706  ;;  %v316_v24 = vpop.permute.xlu0 %315 }
  0x99   : > { %v477_v29 = vmul.f32 %v2339_v23, %v316_v24  ;;  %v837_v33 = vmul.f32 %v2350_v28, %v707_v22 }
  0x9a   : > { %1912 = vset.pattern.permute.xlu1 %v2014_v2 }
  0x9b   : > { %762 = vperm.xlu1 %1912, %v294_v6   ;;  %794 = vperm.xlu0 %1935, %v2347_v27  }
  0x9d   : > { %v321_v30 = vpop.permute.xlu1 %320  ;;  %v511_v31 = vpop.permute.xlu0 %510 }
  0x9e   : > { %v641_v32 = vmul.f32 %v2344_v26, %v511_v31  ;;  %v478_v53 = vmul.f32 %v2339_v23, %v321_v30 }
  0x9f   : > { %1913 = vset.pattern.permute.xlu1 %v2016_v25  ;;  %810 = vperm.xlu0 %1935, %v2322_v16  }
  0xa0   : > { %v673_v34 = vadd.f32 %v641_v32, %v477_v29  ;;  %570 = vperm.xlu1 %1913, %v295_v11  }
  0xa2   : > { %v869_v36 = vadd.f32 %v837_v33, %v673_v34  ;;  %v515_v37 = vpop.permute.xlu1 %514  ;;  %v2362_v38 = vpop.permute.xlu0 %340 }
  0xa3   : > { %814 = vperm.xlu0 %1935, %v2365_v39   ;;  %v642_v51 = vmul.f32 %v2344_v26, %v515_v37 }
  0xa4   : > { %1914 = vset.pattern.permute.xlu1 %v2014_v2  ;;  %v908_v40 = vadd.f32 %v2360_v35, %v869_v36 }
  0xa5   : > { %766 = vperm.xlu1 %1914, %v295_v11   ;;  %v674_v56 = vadd.f32 %v642_v51, %v478_v53 }
  0xa6   : > { %v2373_v42 = vpop.permute.xlu0 %345  ;;  %v940_v43 = vmax.f32 %v908_v40, 0.0  ;;  %v482_v40 = vmul.f32 %v2339_v23, %v2362_v38 }
  0xa7   : > { %v326_v44 = vpop.permute.xlu1 %325  ;;  %1940 = vset.pattern.permute.xlu0 %v2016_v25 }
  0xa8   : > { %1081 = vmatmul.mubr.f32.vlgmr.msra.gmra.mrb[0].mxu0 %v940_v43  ;;  %622 = vperm.xlu0 %1940, %v2371_v41   ;;  %v479_v59 = vmul.f32 %v2339_v23, %v326_v44 }
  0xa9   : > { %1915 = vset.pattern.permute.xlu1 %v2016_v25  ;;  %1086 = vmatprep.mubr.f32.mxu0 %v2017_v45 }
  0xaa   : > { %574 = vperm.xlu1 %1915, %v2259_v63   ;;  %v2383_v47 = vpop.permute.xlu0 %365 }
  0xac   : > { %v519_v48 = vpop.permute.xlu1 %518  ;;  %626 = vperm.xlu0 %1940, %v2380_v46  }
  0xad   : > { %v643_v57 = vmul.f32 %v2344_v26, %v519_v48 }
  0xae   : > { %1916 = vset.pattern.permute.xlu1 %v2015_v3  ;;  %v2387_v49 = vpop.permute.xlu0 %370 }
  0xaf   : > { %400 = vperm.xlu1 %1916, %v2265_v0   ;;  %v675_v63 = vadd.f32 %v643_v57, %v479_v59 }
  0xb0   : > { %1944 = vset.pattern.permute.xlu0 %v2015_v3 }
  0xb1   : > { %v331_v52 = vpop.permute.xlu1 %330  ;;  %465 = vperm.xlu0 %1944, %v2390_v50  }
  0xb2   : > { %v480_v37 = vmul.f32 %v2339_v23, %v331_v52 }
  0xb3   : > { %1917 = vset.pattern.permute.xlu1 %v2016_v25  ;;  %v711_v55 = vpop.permute.xlu0 %710 }
  0xb4   : > { %v838_v58 = vmul.f32 %v2350_v28, %v711_v55  ;;  %578 = vperm.xlu1 %1917, %v2265_v0  }
  0xb5   : > { %470 = vperm.xlu0 %1944, %v2398_v54  }
  0xb6   : > { %v870_v60 = vadd.f32 %v838_v58, %v674_v56  ;;  %v719_v61 = vpop.permute.xlu1 %718 }
  0xb7   : > { %v715_v62 = vpop.permute.xlu0 %714  ;;  %v840_v44 = vmul.f32 %v2350_v28, %v719_v61 }
  0xb8   : > { %v839_v1 = vmul.f32 %v2350_v28, %v715_v62  ;;  %1919 = vset.pattern.permute.xlu1 %v2015_v3  ;;  %v909_v4 = vadd.f32 %v2360_v35, %v870_v60 }
  0xb9   : > { %405 = vperm.xlu1 %1919, %v2281_v7   ;;  %1948 = vset.pattern.permute.xlu0 %v2014_v2 }
  0xba   : > { %v871_v5 = vadd.f32 %v839_v1, %v675_v63  ;;  %v941_v0 = vmax.f32 %v909_v4, 0.0  ;;  %830 = vperm.xlu0 %1948, %v2398_v54  }
  0xbb   : > { %v336_v6 = vpop.permute.xlu1 %335  ;;  %v731_v11 = vpop.permute.xlu0 %730 }
  0xbc   : > { %1087 = vmatmul.mubr.f32.gmra.mrb[2].mxu0 %v941_v0  ;;  %v910_v15 = vadd.f32 %v2360_v35, %v871_v5  ;;  %v481_v53 = vmul.f32 %v2339_v23, %v336_v6 }
  0xbd   : > { %1920 = vset.pattern.permute.xlu1 %v2014_v2  ;;  %1092 = vmatprep.mubr.f32.mxu0 %v2017_v45 }
  0xbe   : > { %778 = vperm.xlu1 %1920, %v2281_v7   ;;  %v942_v20 = vmax.f32 %v910_v15, 0.0 }
  0xbf   : > { %v735_v21 = vpop.permute.xlu0 %734 }
  0xc0   : > { %v723_v22 = vpop.permute.xlu1 %722  ;;  %1093 = vmatmul.mubr.f32.gmra.mrb[4].mxu0 %v942_v20  ;;  %v844_v15 = vmul.f32 %v2350_v28, %v735_v21 }
  0xc1   : > { %1098 = vmatprep.mubr.f32.mxu0 %v2017_v45  ;;  %v841_v59 = vmul.f32 %v2350_v28, %v723_v22 }
  0xc2   : > { %1921 = vset.pattern.permute.xlu1 %v2015_v3 }
  0xc3   : > { %410 = vperm.xlu1 %1921, %v2286_v8   ;;  %v2419_v24 = vpop.permute.xlu0 %750 }
  0xc5   : > { %v531_v29 = vpop.permute.xlu1 %530 }
  0xc6   : > { %v646_v43 = vmul.f32 %v2344_v26, %v531_v29 }
  0xc7   : > { %1922 = vset.pattern.permute.xlu1 %v2014_v2  ;;  %v2422_v30 = vpop.permute.xlu0 %754 }
  0xc8   : > { %782 = vperm.xlu1 %1922, %v2286_v8   ;;  %v678_v58 = vadd.f32 %v646_v43, %v482_v40 }
  0xca   : > { %v727_v7 = vpop.permute.xlu1 %726 }
  0xcb   : > { %v2425_v31 = vpop.permute.xlu0 %770  ;;  %v842_v51 = vmul.f32 %v2350_v28, %v727_v7 }
  0xcc   : > { %1923 = vset.pattern.permute.xlu1 %v2016_v25 }
  0xcd   : > { %590 = vperm.xlu1 %1923, %v2308_v12   ;;  %v874_v61 = vadd.f32 %v842_v51, %v678_v58 }
  0xcf   : > { %v535_v32 = vpop.permute.xlu1 %534  ;;  %v2429_v33 = vpop.permute.xlu0 %774  ;;  %v913_v7 = vadd.f32 %v2360_v35, %v874_v61 }
  0xd0   : > { %v647_v55 = vmul.f32 %v2344_v26, %v535_v32 }
  0xd1   : > { %1924 = vset.pattern.permute.xlu1 %v2014_v2 }
  0xd2   : > { %786 = vperm.xlu1 %1924, %v2308_v12   ;;  %v483_v12 = vmul.f32 %v2339_v23, %v2373_v42  ;;  %v843_v42 = vmul.f32 %v2350_v28, %v731_v11 }
  0xd4   : > { %v351_v34 = vpop.permute.xlu1 %350  ;;  %v523_v36 = vpop.permute.xlu0 %522  ;;  %v679_v62 = vadd.f32 %v647_v55, %v483_v12 }
  0xd5   : > { %v644_v8 = vmul.f32 %v2344_v26, %v523_v36  ;;  %v484_v0 = vmul.f32 %v2339_v23, %v351_v34 }
  0xd6   : > { %1925 = vset.pattern.permute.xlu1 %v2016_v25  ;;  %v875_v11 = vadd.f32 %v843_v42, %v679_v62  ;;  %v487_v42 = vmul.f32 %v2339_v23, %v2383_v47 }
  0xd7   : > { %v676_v48 = vadd.f32 %v644_v8, %v480_v37  ;;  %594 = vperm.xlu1 %1925, %v2313_v13   ;;  %v945_v8 = vmax.f32 %v913_v7, 0.0  ;;  %v2018_v7 = vmov 0.0|0.0  }
  0xd8   : > { %v527_v52 = vpop.permute.xlu0 %526  ;;  %v914_v40 = vadd.f32 %v2360_v35, %v875_v11  ;;  %1804 = vmatprep.subr.bf16.mxu1 %v2018_v7  ;;  %1756 = vmatprep.subr.bf16.mxu0 %v2018_v7 }
  0xd9   : > { %v872_v38 = vadd.f32 %v840_v44, %v676_v48  ;;  %v645_v56 = vmul.f32 %v2344_v26, %v527_v52  ;;  %v539_v57 = vpop.permute.xlu1 %538 }
  0xda   : > { %v648_v1 = vmul.f32 %v2344_v26, %v539_v57  ;;  %v946_v12 = vmax.f32 %v914_v40, 0.0  ;;  %v1341_v40 = vld [vmem:[%s2997_s5 + $0x20] sm:$0xff] }
  0xdb   : > { %v677_v60 = vadd.f32 %v645_v56, %v481_v53  ;;  %1926 = vset.pattern.permute.xlu1 %v2015_v3  ;;  %v911_v13 = vadd.f32 %v2360_v35, %v872_v38 }
  0xdc   : > { %425 = vperm.xlu1 %1926, %v2347_v27   ;;  %v543_v20 = vpop.permute.xlu0 %542  ;;  %v680_v22 = vadd.f32 %v648_v1, %v484_v0  ;;  %v488_v0 = vmul.f32 %v2339_v23, %v2387_v49 }
  0xdd   : > { %v873_v63 = vadd.f32 %v841_v59, %v677_v60  ;;  %v943_v4 = vmax.f32 %v911_v13, 0.0  ;;  %v649_v34 = vmul.f32 %v2344_v26, %v543_v20 }
  0xde   : > { %v356_v5 = vpop.permute.xlu1 %355  ;;  %v876_v21 = vadd.f32 %v844_v15, %v680_v22  ;;  %v848_v22 = vmul.f32 %v2350_v28, %v2419_v24  ;;  %v1340_v24 = vld [vmem:[%s2997_s5 + $0x18] sm:$0xff] }
  0xdf   : > { %1099 = vmatmul.mubr.f32.gmra.mrb[6].mxu0 %v943_v4  ;;  %v912_v6 = vadd.f32 %v2360_v35, %v873_v63  ;;  %v485_v32 = vmul.f32 %v2339_v23, %v356_v5 }
  0xe0   : > { %1927 = vset.pattern.permute.xlu1 %v2016_v25  ;;  %1104 = vmatprep.mubr.f32.mxu0 %v2017_v45  ;;  %v547_v43 = vpop.permute.xlu0 %546  ;;  %v915_v51 = vadd.f32 %v2360_v35, %v876_v21 }
  0xe1   : > { %598 = vperm.xlu1 %1927, %v2347_v27   ;;  %v944_v29 = vmax.f32 %v912_v6, 0.0  ;;  %v681_v27 = vadd.f32 %v649_v34, %v485_v32  ;;  %v650_v53 = vmul.f32 %v2344_v26, %v547_v43  ;;  %v1338_v6 = vld [vmem:[%s2997_s5 + $0x8] sm:$0xff]  ;;  %v1339_v34 = vld [vmem:[%s2997_s5 + $0x10] sm:$0xff] }
  0xe2   : > { %v947_v38 = vmax.f32 %v915_v51, 0.0  ;;  %v1760_v21 = vpack.c.bf16 %v1340_v24, %v1339_v34  ;;  %v849_v51 = vmul.f32 %v2350_v28, %v2422_v30  ;;  %v1351_v34 = vld [vmem:[%s2997_s5 + $0x70] sm:$0xff]  ;;  %v1352_v24 = vld [vmem:[%s2997_s5 + $0x78] sm:$0xff] }
  0xe3   : > { %v739_v36 = vpop.permute.xlu1 %738  ;;  %1105 = vmatmul.mubr.f32.gmra.mrb[8].mxu0 %v944_v29 }
  0xe4   : > { %1110 = vmatprep.mubr.f32.mxu0 %v2017_v45  ;;  %v845_v37 = vmul.f32 %v2350_v28, %v739_v36  ;;  %v2490_v47 = vpop.permute.xlu0 %562 }
  0xe5   : > { %1928 = vset.pattern.permute.xlu1 %v2015_v3 }
  0xe6   : > { %430 = vperm.xlu1 %1928, %v2291_v9   ;;  %v877_v48 = vadd.f32 %v845_v37, %v681_v27  ;;  %v1342_v27 = vld [vmem:[%s2997_s5 + $0x28] sm:$0xff] }
  0xe7   : > { %1111 = vmatmul.mubr.f32.gmra.mrb[10].mxu0 %v945_v8  ;;  %v1763_v43 = vpack.c.bf16 %v1342_v27, %v1341_v40  ;;  %v1354_v40 = vld [vmem:[%s2997_s5 + $0x88] sm:$0xff] }
  0xe8   : > { %v361_v44 = vpop.permute.xlu1 %360  ;;  %1116 = vmatprep.mubr.f32.mxu0 %v2017_v45  ;;  %v916_v56 = vadd.f32 %v2360_v35, %v877_v48  ;;  %v2514_v36 = vpop.permute.xlu0 %566 }
  0xe9   : > { %v486_v52 = vmul.f32 %v2339_v23, %v361_v44 }
  0xea   : > { %1929 = vset.pattern.permute.xlu1 %v2014_v2  ;;  %v948_v60 = vmax.f32 %v916_v56, 0.0 }
  0xeb   : > { %798 = vperm.xlu1 %1929, %v2291_v9   ;;  %1117 = vmatmul.mubr.f32.gmra.mrb[12].mxu0 %v946_v12  ;;  %v682_v57 = vadd.f32 %v650_v53, %v486_v52 }
  0xec   : > { %1122 = vmatprep.mubr.f32.mxu0 %v2017_v45  ;;  %v2530_v12 = vpop.permute.xlu0 %582 }
  0xed   : > { %v743_v55 = vpop.permute.xlu1 %742 }
  0xee   : > { %v846_v58 = vmul.f32 %v2350_v28, %v743_v55  ;;  %v1344_v55 = vld [vmem:[%s2997_s5 + $0x38] sm:$0xff] }
  0xef   : > { %1930 = vset.pattern.permute.xlu1 %v2015_v3  ;;  %1123 = vmatmul.mubr.f32.gmra.mrb[14].mxu0 %v947_v38 }
  0xf0   : > { %v878_v59 = vadd.f32 %v846_v58, %v682_v57  ;;  %435 = vperm.xlu1 %1930, %v2296_v10   ;;  %1128 = vmatprep.mubr.f32.mxu0 %v2017_v45  ;;  %v1345_v58 = vld [vmem:[%s2997_s5 + $0x40] sm:$0xff] }
  0xf2   : > { %v551_v9 = vpop.permute.xlu1 %550  ;;  %v917_v13 = vadd.f32 %v2360_v35, %v878_v59  ;;  %v1346_v59 = vld [vmem:[%s2997_s5 + $0x48] sm:$0xff] }
  0xf3   : > { %1129 = vmatmul.mubr.f32.gmra.mrb[16].mxu0 %v948_v60  ;;  %v651_v61 = vmul.f32 %v2344_v26, %v551_v9  ;;  %v2554_v60 = vpop.permute.xlu0 %586  ;;  %v1769_v9 = vpack.c.bf16 %v1346_v59, %v1345_v58 }
  0xf4   : > { %1932 = vset.pattern.permute.xlu1 %v2014_v2  ;;  %1134 = vmatprep.mubr.f32.mxu0 %v2017_v45  ;;  %v949_v62 = vmax.f32 %v917_v13, 0.0  ;;  %v654_v13 = vmul.f32 %v2344_v26, %v2490_v47 }
  0xf5   : > { %802 = vperm.xlu1 %1932, %v2296_v10   ;;  %v683_v1 = vadd.f32 %v651_v61, %v487_v42  ;;  %v1337_v10 = vld [vmem:[%s2997_s5] sm:$0xff] }
  0xf6   : > { %v1757_v11 = vpack.c.bf16 %v1338_v6, %v1337_v10  ;;  %v1349_v6 = vld [vmem:[%s2997_s5 + $0x60] sm:$0xff] }
  0xf7   : > { %v747_v63 = vpop.permute.xlu1 %746  ;;  %1135 = vmatmul.mubr.f32.gmra.mrb[18].mxu0 %v949_v62 }
  0xf8   : > { %v847_v4 = vmul.f32 %v2350_v28, %v747_v63  ;;  %1140 = vmatprep.mubr.f32.mxu0 %v2017_v45  ;;  %1820 = vmatpush1.bf16.msra.mxu1 %v1757_v11  ;;  %v1347_v63 = vld [vmem:[%s2997_s5 + $0x50] sm:$0xff] }
  0xf9   : > { %1933 = vset.pattern.permute.xlu1 %v2016_v25  ;;  %1758 = vmatpush1.bf16.msra.mxu0 %v1757_v11 }
  0xfa   : > { %v879_v5 = vadd.f32 %v847_v4, %v683_v1  ;;  %610 = vperm.xlu1 %1933, %v2318_v14   ;;  %1805 = vmatprep.subr.bf16.mxu1 %v2018_v7  ;;  %v1348_v1 = vld [vmem:[%s2997_s5 + $0x58] sm:$0xff] }
  0xfb   : > { %1759 = vmatprep.subr.bf16.mxu0 %v2018_v7 }
  0xfc   : > { %v555_v15 = vpop.permute.xlu1 %554  ;;  %v918_v20 = vadd.f32 %v2360_v35, %v879_v5  ;;  %1821 = vmatpush1.bf16.msra.mxu1 %v1760_v21  ;;  %v1772_v5 = vpack.c.bf16 %v1348_v1, %v1347_v63 }
  0xfd   : > { %v652_v29 = vmul.f32 %v2344_v26, %v555_v15  ;;  %1761 = vmatpush1.bf16.msra.mxu0 %v1760_v21  ;;  %1806 = vmatprep.subr.bf16.mxu1 %v2018_v7  ;;  %v1350_v15 = vld [vmem:[%s2997_s5 + $0x68] sm:$0xff] }
  0xfe   : > { %1934 = vset.pattern.permute.xlu1 %v2014_v2  ;;  %v950_v49 = vmax.f32 %v918_v20, 0.0  ;;  %1762 = vmatprep.subr.bf16.mxu0 %v2018_v7  ;;  %v1775_v20 = vpack.c.bf16 %v1350_v15, %v1349_v6  ;;  %v853_v6 = vmul.f32 %v2350_v28, %v2425_v31 }
  0xff   : > { %v684_v32 = vadd.f32 %v652_v29, %v488_v0  ;;  %806 = vperm.xlu1 %1934, %v2318_v14   ;;  %v655_v29 = vmul.f32 %v2344_v26, %v2514_v36  ;;  %v1778_v36 = vpack.c.bf16 %v1352_v24, %v1351_v34  ;;  %v1365_v34 = vld [vmem:[%s2997_s5 + $0xe0] sm:$0xff] }
 0x100   : > { %1141 = vmatmul.mubr.f32.gmra.mrb[20].mxu0 %v950_v49  ;;  %1822 = vmatpush1.bf16.msra.mxu1 %v1763_v43 }
 0x101   : > { %v880_v37 = vadd.f32 %v848_v22, %v684_v32  ;;  %v376_v8 = vpop.permute.xlu1 %375  ;;  %1146 = vmatprep.mubr.f32.mxu0 %v2017_v45  ;;  %1807 = vmatprep.subr.bf16.mxu1 %v2018_v7 }
 0x102   : > { %v489_v52 = vmul.f32 %v2339_v23, %v376_v8  ;;  %1764 = vmatpush1.bf16.msra.mxu0 %v1763_v43 }
 0x103   : > { %1936 = vset.pattern.permute.xlu1 %v2016_v25  ;;  %v919_v14 = vadd.f32 %v2360_v35, %v880_v37  ;;  %1765 = vmatprep.subr.bf16.mxu0 %v2018_v7 }
 0x104   : > { %614 = vperm.xlu1 %1936, %v2322_v16   ;;  %v1343_v16 = vld [vmem:[%s2997_s5 + $0x30] sm:$0xff] }
 0x105   : > { %v951_v44 = vmax.f32 %v919_v14, 0.0  ;;  %v1766_v30 = vpack.c.bf16 %v1344_v55, %v1343_v16 }
 0x106   : > { %v559_v48 = vpop.permute.xlu1 %558 }
 0x107   : > { %v653_v53 = vmul.f32 %v2344_v26, %v559_v48  ;;  %1147 = vmatmul.mubr.f32.gmra.mrb[22].mxu0 %v951_v44  ;;  %1823 = vmatpush1.bf16.msra.mxu1 %v1766_v30 }
 0x108   : > { %1937 = vset.pattern.permute.xlu1 %v2015_v3  ;;  %1152 = vmatprep.mubr.f32.mxu0 %v2017_v45 }
 0x109   : > { %v685_v38 = vadd.f32 %v653_v53, %v489_v52  ;;  %450 = vperm.xlu1 %1937, %v2365_v39   ;;  %1808 = vmatprep.subr.bf16.mxu1 %v2018_v7  ;;  %v1355_v52 = vld [vmem:[%s2997_s5 + $0x90] sm:$0xff] }
 0x10a   : > { %1767 = vmatpush1.bf16.msra.mxu0 %v1766_v30 }
 0x10b   : > { %v881_v56 = vadd.f32 %v849_v51, %v685_v38  ;;  %v381_v57 = vpop.permute.xlu1 %380  ;;  %1824 = vmatpush1.bf16.msra.mxu1 %v1769_v9  ;;  %1768 = vmatprep.subr.bf16.mxu0 %v2018_v7  ;;  %v1357_v38 = vld [vmem:[%s2997_s5 + $0xa0] sm:$0xff] }
 0x10c   : > { %v490_v42 = vmul.f32 %v2339_v23, %v381_v57  ;;  %1809 = vmatprep.subr.bf16.mxu1 %v2018_v7 }
 0x10d   : > { %1938 = vset.pattern.permute.xlu1 %v2016_v25  ;;  %v920_v61 = vadd.f32 %v2360_v35, %v881_v56  ;;  %v1358_v56 = vld [vmem:[%s2997_s5 + $0xa8] sm:$0xff] }
 0x10e   : > { %618 = vperm.xlu1 %1938, %v2365_v39   ;;  %v686_v47 = vadd.f32 %v654_v13, %v490_v42  ;;  %v2572_v39 = vpop.permute.xlu0 %602  ;;  %1770 = vmatpush1.bf16.msra.mxu0 %v1769_v9  ;;  %v1359_v42 = vld [vmem:[%s2997_s5 + $0xb0] sm:$0xff] }
 0x10f   : > { %v952_v62 = vmax.f32 %v920_v61, 0.0  ;;  %1825 = vmatpush1.bf16.msra.mxu1 %v1772_v5  ;;  %1771 = vmatprep.subr.bf16.mxu0 %v2018_v7  ;;  %v1360_v61 = vld [vmem:[%s2997_s5 + $0xb8] sm:$0xff] }
 0x110   : > { %v759_v4 = vpop.permute.xlu1 %758  ;;  %1810 = vmatprep.subr.bf16.mxu1 %v2018_v7 }
 0x111   : > { %v850_v0 = vmul.f32 %v2350_v28, %v759_v4  ;;  %1153 = vmatmul.mubr.f32.gmra.mrb[24].mxu0 %v952_v62  ;;  %v1790_v4 = vpack.c.bf16 %v1360_v61, %v1359_v42 }
 0x112   : > { %1939 = vset.pattern.permute.xlu1 %v2015_v3  ;;  %1158 = vmatprep.mubr.f32.mxu0 %v2017_v45  ;;  %v2596_v21 = vpop.permute.xlu0 %606 }
 0x113   : > { %v882_v10 = vadd.f32 %v850_v0, %v686_v47  ;;  %455 = vperm.xlu1 %1939, %v2371_v41   ;;  %1773 = vmatpush1.bf16.msra.mxu0 %v1772_v5  ;;  %v1361_v0 = vld [vmem:[%s2997_s5 + $0xc0] sm:$0xff] }
 0x114   : > { %1826 = vmatpush1.bf16.msra.mxu1 %v1775_v20  ;;  %1774 = vmatprep.subr.bf16.mxu0 %v2018_v7 }
 0x115   : > { %v386_v11 = vpop.permute.xlu1 %385  ;;  %v921_v22 = vadd.f32 %v2360_v35, %v882_v10  ;;  %1811 = vmatprep.subr.bf16.mxu1 %v2018_v7  ;;  %v1362_v10 = vld [vmem:[%s2997_s5 + $0xc8] sm:$0xff] }
 0x116   : > { %v491_v49 = vmul.f32 %v2339_v23, %v386_v11  ;;  %v391_v44 = vpop.permute.xlu0 %390 }
 0x117   : > { %1941 = vset.pattern.permute.xlu1 %v2014_v2  ;;  %v953_v32 = vmax.f32 %v921_v22, 0.0  ;;  %1776 = vmatpush1.bf16.msra.mxu0 %v1775_v20  ;;  %v492_v16 = vmul.f32 %v2339_v23, %v391_v44  ;;  %v1793_v20 = vpack.c.bf16 %v1362_v10, %v1361_v0  ;;  %v1363_v22 = vld [vmem:[%s2997_s5 + $0xd0] sm:$0xff] }
 0x118   : > { %818 = vperm.xlu1 %1941, %v2371_v41   ;;  %v687_v8 = vadd.f32 %v655_v29, %v491_v49  ;;  %v1353_v41 = vld [vmem:[%s2997_s5 + $0x80] sm:$0xff]  ;;  %1827 = vmatpush1.bf16.msra.mxu1 %v1778_v36 }
 0x119   : > { %1159 = vmatmul.mubr.f32.gmra.mrb[26].mxu0 %v953_v32  ;;  %v1781_v27 = vpack.c.bf16 %v1354_v40, %v1353_v41  ;;  %1777 = vmatprep.subr.bf16.mxu0 %v2018_v7  ;;  %v1368_v41 = vld [vmem:[%s2997_s5 + $0xf8] sm:$0xff] }
 0x11a   : > { %v763_v37 = vpop.permute.xlu1 %762  ;;  %1164 = vmatprep.mubr.f32.mxu0 %v2017_v45  ;;  %1812 = vmatprep.subr.bf16.mxu1 %v2018_v7  ;;  %v396_v9 = vpop.permute.xlu0 %395 }
 0x11b   : > { %v851_v14 = vmul.f32 %v2350_v28, %v763_v37  ;;  %1779 = vmatpush1.bf16.msra.mxu0 %v1778_v36  ;;  %v493_v62 = vmul.f32 %v2339_v23, %v396_v9  ;;  %v854_v36 = vmul.f32 %v2350_v28, %v2429_v33  ;;  %v659_v33 = vmul.f32 %v2344_v26, %v2530_v12 }
 0x11c   : > { %1942 = vset.pattern.permute.xlu1 %v2015_v3  ;;  %v1356_v3 = vld [vmem:[%s2997_s5 + $0x98] sm:$0xff]  ;;  %1828 = vmatpush1.bf16.msra.mxu1 %v1781_v27 }
 0x11d   : > { %v883_v43 = vadd.f32 %v851_v14, %v687_v8  ;;  %460 = vperm.xlu1 %1942, %v2380_v46   ;;  %1780 = vmatprep.subr.bf16.mxu0 %v2018_v7  ;;  %v1784_v30 = vpack.c.bf16 %v1356_v3, %v1355_v52  ;;  %v1367_v14 = vld [vmem:[%s2997_s5 + $0xf0] sm:$0xff] }
 0x11e   : > { %1813 = vmatprep.subr.bf16.mxu1 %v2018_v7  ;;  %v416_v52 = vpop.permute.xlu0 %415 }
 0x11f   : > { %v571_v48 = vpop.permute.xlu1 %570  ;;  %v922_v51 = vadd.f32 %v2360_v35, %v883_v43  ;;  %1782 = vmatpush1.bf16.msra.mxu0 %v1781_v27 }
 0x120   : > { %v656_v53 = vmul.f32 %v2344_v26, %v571_v48  ;;  %1829 = vmatpush1.bf16.msra.mxu1 %v1784_v30  ;;  %1783 = vmatprep.subr.bf16.mxu0 %v2018_v7  ;;  %v1802_v48 = vpack.c.bf16 %v1368_v41, %v1367_v14 }
 0x121   : > { %1943 = vset.pattern.permute.xlu1 %v2014_v2  ;;  %v954_v55 = vmax.f32 %v922_v51, 0.0  ;;  %1814 = vmatprep.subr.bf16.mxu1 %v2018_v7 }
 0x122   : > { %822 = vperm.xlu1 %1943, %v2380_v46   ;;  %v688_v58 = vadd.f32 %v656_v53, %v492_v16  ;;  %v1787_v46 = vpack.c.bf16 %v1358_v56, %v1357_v38  ;;  %v421_v38 = vpop.permute.xlu0 %420 }
 0x123   : > { %1165 = vmatmul.mubr.f32.gmra.mrb[28].mxu0 %v954_v55 }
 0x124   : > { %v767_v57 = vpop.permute.xlu1 %766  ;;  %1170 = vmatprep.mubr.f32.mxu0 %v2017_v45  ;;  %1785 = vmatpush1.bf16.msra.mxu0 %v1784_v30 }
 0x125   : > { %v852_v59 = vmul.f32 %v2350_v28, %v767_v57  ;;  %1830 = vmatpush1.bf16.msra.mxu1 %v1787_v46  ;;  %1786 = vmatprep.subr.bf16.mxu0 %v2018_v7 }
 0x126   : > { %1945 = vset.pattern.permute.xlu1 %v2016_v25  ;;  %1815 = vmatprep.subr.bf16.mxu1 %v2018_v7 }
 0x127   : > { %v884_v13 = vadd.f32 %v852_v59, %v688_v58  ;;  %630 = vperm.xlu1 %1945, %v2390_v50   ;;  %v660_v58 = vmul.f32 %v2344_v26, %v2554_v60 }
 0x128   : > { %1788 = vmatpush1.bf16.msra.mxu0 %v1787_v46 }
 0x129   : > { %v575_v63 = vpop.permute.xlu1 %574  ;;  %v923_v1 = vadd.f32 %v2360_v35, %v884_v13  ;;  %1831 = vmatpush1.bf16.msra.mxu1 %v1790_v4  ;;  %1789 = vmatprep.subr.bf16.mxu0 %v2018_v7 }
 0x12a   : > { %v657_v5 = vmul.f32 %v2344_v26, %v575_v63  ;;  %1816 = vmatprep.subr.bf16.mxu1 %v2018_v7 }
 0x12b   : > { %1946 = vset.pattern.permute.xlu1 %v2014_v2  ;;  %v955_v47 = vmax.f32 %v923_v1, 0.0 }
 0x12c   : > { %v689_v15 = vadd.f32 %v657_v5, %v493_v62  ;;  %826 = vperm.xlu1 %1946, %v2390_v50   ;;  %v1364_v50 = vld [vmem:[%s2997_s5 + $0xd8] sm:$0xff]  ;;  %1791 = vmatpush1.bf16.msra.mxu0 %v1790_v4  ;;  %v497_v62 = vmul.f32 %v2339_v23, %v416_v52 }
 0x12d   : > { %1171 = vmatmul.mubr.f32.gmra.mrb[30].mxu0 %v955_v47  ;;  %1832 = vmatpush1.bf16.msra.mxu1 %v1793_v20  ;;  %v1796_v49 = vpack.c.bf16 %v1364_v50, %v1363_v22 }
 0x12e   : > { %v885_v2 = vadd.f32 %v853_v6, %v689_v15  ;;  %v401_v11 = vpop.permute.xlu1 %400  ;;  %1176 = vmatprep.mubr.f32.mxu0 %v2017_v45  ;;  %1792 = vmatprep.subr.bf16.mxu0 %v2018_v7  ;;  %v498_v6 = vmul.f32 %v2339_v23, %v421_v38 }
 0x12f   : > { %1817 = vmatprep.subr.bf16.mxu1 %v2018_v7  ;;  %v494_v24 = vmul.f32 %v2339_v23, %v401_v11 }
 0x130   : > { %1947 = vset.pattern.permute.xlu1 %v2016_v25  ;;  %v924_v31 = vadd.f32 %v2360_v35, %v885_v2  ;;  %v1366_v25 = vld [vmem:[%s2997_s5 + $0xe8] sm:$0xff]  ;;  %1794 = vmatpush1.bf16.msra.mxu0 %v1793_v20 }
 0x131   : > { %634 = vperm.xlu1 %1947, %v2398_v54   ;;  %1833 = vmatpush1.bf16.msra.mxu1 %v1796_v49  ;;  %v1799_v8 = vpack.c.bf16 %v1366_v25, %v1365_v34 }
 0x132   : > { %v956_v29 = vmax.f32 %v924_v31, 0.0  ;;  %1795 = vmatprep.subr.bf16.mxu0 %v2018_v7  ;;  %1818 = vmatprep.subr.bf16.mxu1 %v2018_v7 }
 0x133   : > { %v579_v32 = vpop.permute.xlu1 %578 }
 0x134   : > { %v658_v54 = vmul.f32 %v2344_v26, %v579_v32  ;;  %1177 = vmatmul.mubr.f32.gmra.mrb[32].mxu0 %v956_v29 }
 0x135   : > { %1182 = vmatprep.mubr.f32.mxu0 %v2017_v45  ;;  %1797 = vmatpush1.bf16.msra.mxu0 %v1796_v49 }
 0x136   : > { %v690_v37 = vadd.f32 %v658_v54, %v494_v24  ;;  %1834 = vmatpush1.bf16.msra.mxu1 %v1799_v8  ;;  %1798 = vmatprep.subr.bf16.mxu0 %v2018_v7 }
 0x137   : > { %1819 = vmatprep.subr.bf16.mxu1 %v2018_v7 }
 0x138   : > { %v886_v40 = vadd.f32 %v854_v36, %v690_v37  ;;  %v406_v27 = vpop.permute.xlu1 %405 }
 0x139   : > { %v495_v43 = vmul.f32 %v2339_v23, %v406_v27  ;;  %1800 = vmatpush1.bf16.msra.mxu0 %v1799_v8  ;;  %v664_v27 = vmul.f32 %v2344_v26, %v2572_v39 }
 0x13a   : > { %v925_v44 = vadd.f32 %v2360_v35, %v886_v40  ;;  %1835 = vmatpush1.bf16.msra.mxu1 %v1802_v48  ;;  %1801 = vmatprep.subr.bf16.mxu0 %v2018_v7  ;;  %v2706_v7 = vpop.permute.xlu0 %440 }
 0x13b   : > { %v691_v53 = vadd.f32 %v659_v33, %v495_v43 }
 0x13c   : > { %v957_v51 = vmax.f32 %v925_v44, 0.0 }
 0x13d   : > { %v779_v3 = vpop.permute.xlu1 %778  ;;  %1803 = vmatpush1.bf16.msra.mxu0 %v1802_v48 }
 0x13e   : > { %v855_v16 = vmul.f32 %v2350_v28, %v779_v3  ;;  %1183 = vmatmul.mubr.f32.gmra.mrb[34].mxu0 %v957_v51  ;;  %v2711_v4 = vpop.permute.xlu0 %445 }
 0x13f   : > { %1188 = vmatprep.mubr.f32.mxu0 %v2017_v45 }
 0x140   : > { %v887_v12 = vadd.f32 %v855_v16, %v691_v53 }
 0x142   : > { %v411_v55 = vpop.permute.xlu1 %410  ;;  %v926_v30 = vadd.f32 %v2360_v35, %v887_v12  ;;  %v791_v10 = vpop.permute.xlu0 %790  ;;  %v665_v12 = vmul.f32 %v2344_v26, %v2596_v21  ;;  %v502_v21 = vmul.f32 %v2339_v23, %v2706_v7 }
 0x143   : > { %v496_v56 = vmul.f32 %v2339_v23, %v411_v55  ;;  %v858_v11 = vmul.f32 %v2350_v28, %v791_v10 }
 0x144   : > { %v958_v57 = vmax.f32 %v926_v30, 0.0 }
 0x145   : > { %v692_v9 = vadd.f32 %v660_v58, %v496_v56 }
 0x146   : > { %1189 = vmatmul.mubr.f32.gmra.mrb[36].mxu0 %v958_v57  ;;  %v795_v32 = vpop.permute.xlu0 %794 }
 0x147   : > { %v783_v59 = vpop.permute.xlu1 %782  ;;  %1194 = vmatprep.mubr.f32.mxu0 %v2017_v45  ;;  %v859_v36 = vmul.f32 %v2350_v28, %v795_v32 }
 0x148   : > { %v856_v46 = vmul.f32 %v2350_v28, %v783_v59 }
 0x14a   : > { %v888_v13 = vadd.f32 %v856_v46, %v692_v9 }
 0x14c   : > { %v591_v42 = vpop.permute.xlu1 %590  ;;  %v927_v61 = vadd.f32 %v2360_v35, %v888_v13 }
 0x14d   : > { %v661_v63 = vmul.f32 %v2344_v26, %v591_v42 }
 0x14e   : > { %v959_v1 = vmax.f32 %v927_v61, 0.0 }
 0x14f   : > { %v693_v5 = vadd.f32 %v661_v63, %v497_v62  ;;  %v811_v63 = vpop.permute.xlu0 %810 }
 0x150   : > { %1195 = vmatmul.mubr.f32.gmra.mrb[38].mxu0 %v959_v1 }
 0x151   : > { %v787_v60 = vpop.permute.xlu1 %786  ;;  %1200 = vmatprep.mubr.f32.mxu0 %v2017_v45 }
 0x152   : > { %v857_v47 = vmul.f32 %v2350_v28, %v787_v60 }
 0x154   : > { %v889_v0 = vadd.f32 %v857_v47, %v693_v5  ;;  %v503_v5 = vmul.f32 %v2339_v23, %v2711_v4 }
 0x156   : > { %v595_v15 = vpop.permute.xlu1 %594  ;;  %v928_v20 = vadd.f32 %v2360_v35, %v889_v0  ;;  %v863_v0 = vmul.f32 %v2350_v28, %v811_v63 }
 0x157   : > { %v662_v2 = vmul.f32 %v2344_v26, %v595_v15 }
 0x158   : > { %v960_v22 = vmax.f32 %v928_v20, 0.0 }
 0x159   : > { %v694_v50 = vadd.f32 %v662_v2, %v498_v6 }
 0x15a   : > { %1201 = vmatmul.mubr.f32.gmra.mrb[40].mxu0 %v960_v22 }
 0x15b   : > { %v890_v31 = vadd.f32 %v858_v11, %v694_v50  ;;  %v426_v29 = vpop.permute.xlu1 %425  ;;  %1206 = vmatprep.mubr.f32.mxu0 %v2017_v45  ;;  %v815_v11 = vpop.permute.xlu0 %814 }
 0x15c   : > { %v499_v24 = vmul.f32 %v2339_v23, %v426_v29  ;;  %v864_v29 = vmul.f32 %v2350_v28, %v815_v11 }
 0x15d   : > { %v929_v49 = vadd.f32 %v2360_v35, %v890_v31 }
 0x15f   : > { %v961_v34 = vmax.f32 %v929_v49, 0.0 }
 0x160   : > { %v599_v25 = vpop.permute.xlu1 %598 }
 0x161   : > { %v663_v54 = vmul.f32 %v2344_v26, %v599_v25  ;;  %1207 = vmatmul.mubr.f32.gmra.mrb[42].mxu0 %v961_v34  ;;  %v623_v34 = vpop.permute.xlu0 %622 }
 0x162   : > { %1212 = vmatprep.mubr.f32.mxu0 %v2017_v45 }
 0x163   : > { %v695_v37 = vadd.f32 %v663_v54, %v499_v24 }
 0x165   : > { %v891_v8 = vadd.f32 %v859_v36, %v695_v37  ;;  %v431_v14 = vpop.permute.xlu1 %430  ;;  %v669_v36 = vmul.f32 %v2344_v26, %v623_v34 }
 0x166   : > { %v500_v41 = vmul.f32 %v2339_v23, %v431_v14 }
 0x167   : > { %v930_v40 = vadd.f32 %v2360_v35, %v891_v8  ;;  %v1949_v8 = vld [vmem:[%s2994_s2] ss:$0 sm:$0xff] }
 0x168   : > { %v696_v44 = vadd.f32 %v664_v27, %v500_v41 }
 0x169   : > { %v962_v33 = vmax.f32 %v930_v40, 0.0 }
 0x16a   : > { %v799_v43 = vpop.permute.xlu1 %798 }
 0x16b   : > { %v860_v48 = vmul.f32 %v2350_v28, %v799_v43  ;;  %1213 = vmatmul.mubr.f32.gmra.mrb[44].mxu0 %v962_v33 }
 0x16c   : > { %1218 = vmatprep.mubr.f32.mxu0 %v2017_v45 }
 0x16d   : > { %v892_v51 = vadd.f32 %v860_v48, %v696_v44  ;;  %v627_v44 = vpop.permute.xlu0 %626 }
 0x16f   : > { %v436_v52 = vpop.permute.xlu1 %435  ;;  %v931_v3 = vadd.f32 %v2360_v35, %v892_v51 }
 0x170   : > { %v501_v53 = vmul.f32 %v2339_v23, %v436_v52 }
 0x171   : > { %v963_v16 = vmax.f32 %v931_v3, 0.0  ;;  %v670_v3 = vmul.f32 %v2344_v26, %v627_v44 }
 0x172   : > { %v697_v55 = vadd.f32 %v665_v12, %v501_v53 }
 0x173   : > { %1219 = vmatmul.mubr.f32.gmra.mrb[46].mxu0 %v963_v16 }
 0x174   : > { %v803_v39 = vpop.permute.xlu1 %802  ;;  %1224 = vmatprep.mubr.f32.mxu0 %v2017_v45 }
 0x175   : > { %v861_v30 = vmul.f32 %v2350_v28, %v803_v39 }
 0x177   : > { %v893_v38 = vadd.f32 %v861_v30, %v697_v55  ;;  %v466_v30 = vpop.permute.xlu0 %465 }
 0x179   : > { %v611_v56 = vpop.permute.xlu1 %610  ;;  %v932_v57 = vadd.f32 %v2360_v35, %v893_v38 }
 0x17a   : > { %v666_v58 = vmul.f32 %v2344_v26, %v611_v56 }
 0x17b   : > { %v2739_v59 = vpop.f32.mrb[0].mxu0  ;;  %v964_v9 = vmax.f32 %v932_v57, 0.0  ;;  %v507_v57 = vmul.f32 %v2339_v23, %v466_v30 }
 0x17c   : > { %v2741_v46 = vpop.f32.mrb[1].mxu0  ;;  %v698_v42 = vadd.f32 %v666_v58, %v502_v21  ;;  %v471_v21 = vpop.permute.xlu0 %470 }
 0x17d   : > { %1225 = vmatmul.mubr.f32.gmra.mrb[48].mxu0 %v964_v9 }
 0x17e   : > { %v807_v13 = vpop.permute.xlu1 %806  ;;  %1230 = vmatprep.mubr.f32.mxu0 %v2017_v45 }
 0x17f   : > { %v862_v61 = vmul.f32 %v2350_v28, %v807_v13 }
 0x180   : > { %v831_v63 = vpop.permute.xlu0 %830 }
 0x181   : > { %v894_v62 = vadd.f32 %v862_v61, %v698_v42 }
 0x183   : > { %v615_v1 = vpop.permute.xlu1 %614  ;;  %v933_v60 = vadd.f32 %v2360_v35, %v894_v62 }
 0x184   : > { %v667_v47 = vmul.f32 %v2344_v26, %v615_v1  ;;  %v1004_v1 = vld [vmem:[%s2996_s4] sm:$0x3] }
 0x185   : > { %v965_v7 = vmax.f32 %v933_v60, 0.0  ;;  %v2793_v11 = vrot.slane %v1004_v1, %v475_v18 }
 0x186   : > { %v699_v10 = vadd.f32 %v667_v47, %v503_v5  ;;  %v508_v47 = vmul.f32 %v2339_v23, %v471_v21 }
 0x187   : > { %1231 = vmatmul.mubr.f32.gmra.mrb[50].mxu0 %v965_v7  ;;  %v868_v7 = vmul.f32 %v2350_v28, %v831_v63 }
 0x188   : > { %v895_v6 = vadd.f32 %v863_v0, %v699_v10  ;;  %v451_v15 = vpop.permute.xlu1 %450  ;;  %1236 = vmatprep.mubr.f32.mxu0 %v2017_v45  ;;  %v2789_v10 = vrot.slane %v1004_v1, %v639_v19 }
 0x189   : > { %v504_v50 = vmul.f32 %v2339_v23, %v451_v15 }
 0x18a   : > { %v934_v20 = vadd.f32 %v2360_v35, %v895_v6 }
 0x18c   : > { %v966_v2 = vmax.f32 %v934_v20, 0.0 }
 0x18d   : > { %v619_v22 = vpop.permute.xlu1 %618 }
 0x18e   : > { %v668_v4 = vmul.f32 %v2344_v26, %v619_v22  ;;  %1237 = vmatmul.mubr.f32.gmra.mrb[52].mxu0 %v966_v2 }
 0x18f   : > { %v2756_v31 = vpop.f32.mrb[2].mxu0  ;;  %1242 = vmatprep.mubr.f32.mxu0 %v2017_v45 }
 0x190   : > { %v700_v49 = vadd.f32 %v668_v4, %v504_v50  ;;  %v2760_v32 = vpop.f32.mrb[3].mxu0 }
 0x191   : > { %v1091_v18 = vadd.f32 %v2760_v32, %v2789_v10 }
 0x192   : > { %v896_v25 = vadd.f32 %v864_v29, %v700_v49  ;;  %v456_v35 = vpop.permute.xlu1 %455  ;;  %v1083_v29 = vadd.f32 %v2739_v59, %v2793_v11  ;;  %v1089_v59 = vadd.f32 %v2756_v31, %v2793_v11 }
 0x193   : > { %v2762_v24 = vpop.f32.mrb[4].mxu0  ;;  %v505_v54 = vmul.f32 %v2339_v23, %v456_v35 }
 0x194   : > { %v2766_v37 = vpop.f32.mrb[5].mxu0  ;;  %v935_v14 = vadd.f32 %v1949_v8, %v896_v25  ;;  %v1275_v44 = vmax.f32 %v1089_v59, 0.0  ;;  %v1095_v31 = vadd.f32 %v2762_v24, %v2793_v11 }
 0x195   : > { %v701_v27 = vadd.f32 %v669_v36, %v505_v54  ;;  %v1273_v36 = vmax.f32 %v1083_v29, 0.0  ;;  %v1097_v32 = vadd.f32 %v2766_v37, %v2789_v10 }
 0x196   : > { %v967_v41 = vmax.f32 %v935_v14, 0.0 }
 0x197   : > { %v819_v40 = vpop.permute.xlu1 %818 }
 0x198   : > { %v865_v33 = vmul.f32 %v2350_v28, %v819_v40  ;;  %1243 = vmatmul.mubr.f32.gmra.mrb[54].mxu0 %v967_v41 }
 0x199   : > { %1248 = vmatprep.mubr.f32.mxu0 %v2017_v45 }
 0x19a   : > { %v897_v43 = vadd.f32 %v865_v33, %v701_v27 }
 0x19c   : > { %v461_v48 = vpop.permute.xlu1 %460  ;;  %v936_v51 = vadd.f32 %v1949_v8, %v897_v43 }
 0x19d   : > { %v506_v52 = vmul.f32 %v2339_v23, %v461_v48  ;;  %v1085_v23 = vadd.f32 %v2741_v46, %v2789_v10  ;;  %v1278_v48 = vmax.f32 %v1097_v32, 0.0 }
 0x19e   : > { %v968_v53 = vmax.f32 %v936_v51, 0.0 }
 0x19f   : > { %v702_v12 = vadd.f32 %v670_v3, %v506_v52  ;;  %v1274_v17 = vmax.f32 %v1085_v23, 0.0 }
 0x1a0   : > { %1249 = vmatmul.mubr.f32.gmra.mrb[56].mxu0 %v968_v53 }
 0x1a1   : > { %v823_v16 = vpop.permute.xlu1 %822  ;;  %1254 = vmatprep.mubr.f32.mxu0 %v2017_v45 }
 0x1a2   : > { %v866_v39 = vmul.f32 %v2350_v28, %v823_v16 }
 0x1a4   : > { %v898_v55 = vadd.f32 %v866_v39, %v702_v12  ;;  %v1277_v39 = vmax.f32 %v1095_v31, 0.0 }
 0x1a6   : > { %v631_v38 = vpop.permute.xlu1 %630  ;;  %v937_v56 = vadd.f32 %v1949_v8, %v898_v55 }
 0x1a7   : > { %v671_v58 = vmul.f32 %v2344_v26, %v631_v38 }
 0x1a8   : > { %v969_v9 = vmax.f32 %v937_v56, 0.0 }
 0x1a9   : > { %v703_v42 = vadd.f32 %v671_v58, %v507_v57 }
 0x1aa   : > { %1255 = vmatmul.mubr.f32.gmra.mrb[58].mxu0 %v969_v9 }
 0x1ab   : > { %v827_v13 = vpop.permute.xlu1 %826  ;;  %1260 = vmatprep.mubr.f32.mxu0 %v2017_v45 }
 0x1ac   : > { %v867_v61 = vmul.f32 %v2350_v28, %v827_v13 }
 0x1ae   : > { %v899_v62 = vadd.f32 %v867_v61, %v703_v42 }
 0x1b0   : > { %v635_v60 = vpop.permute.xlu1 %634  ;;  %v938_v5 = vadd.f32 %v1949_v8, %v899_v62 }
 0x1b1   : > { %v672_v0 = vmul.f32 %v2344_v26, %v635_v60 }
 0x1b2   : > { %v1100_v6 = vpop.f32.mrb[6].mxu0  ;;  %v970_v15 = vmax.f32 %v938_v5, 0.0 }
 0x1b3   : > { %v704_v20 = vadd.f32 %v672_v0, %v508_v47  ;;  %v1102_v2 = vpop.f32.mrb[7].mxu0  ;;  %v1101_v55 = vadd.f32 %v1100_v6, %v2793_v11 }
 0x1b4   : > { %1261 = vmatmul.mubr.f32.gmra.mrb[60].mxu0 %v970_v15  ;;  %v1103_v51 = vadd.f32 %v1102_v2, %v2789_v10 }
 0x1b5   : > { %v900_v22 = vadd.f32 %v868_v7, %v704_v20  ;;  %1266 = vmatprep.mubr.f32.mxu0 %v2017_v45  ;;  %v1279_v21 = vmax.f32 %v1101_v55, 0.0 }
 0x1b6   : > { %v1106_v26 = vpop.f32.mrb[8].mxu0  ;;  %v1280_v24 = vmax.f32 %v1103_v51, 0.0 }
 0x1b7   : > { %v1107_v28 = vadd.f32 %v1106_v26, %v2793_v11  ;;  %v1108_v19 = vpop.f32.mrb[9].mxu0  ;;  %v939_v50 = vadd.f32 %v1949_v8, %v900_v22  ;;  %v1276_v8 = vmax.f32 %v1091_v18, 0.0 }
 0x1b8   : > { %v1109_v4 = vadd.f32 %v1108_v19, %v2789_v10 }
 0x1b9   : > { %v971_v49 = vmax.f32 %v939_v50, 0.0  ;;  %v1281_v25 = vmax.f32 %v1107_v28, 0.0 }
 0x1ba   : > { %v1112_v34 = vpop.f32.mrb[10].mxu0  ;;  %v1282_v45 = vmax.f32 %v1109_v4, 0.0 }
 0x1bb   : > { %v1113_v46 = vadd.f32 %v1112_v34, %v2793_v11  ;;  %v1114_v35 = vpop.f32.mrb[11].mxu0  ;;  %1267 = vmatmul.mubr.f32.gmra.mrb[62].mxu0 %v971_v49 }
 0x1bc   : > { %v1115_v54 = vadd.f32 %v1114_v35, %v2789_v10  ;;  %1440 = vmatprep.mubr.f32.mxu0 %v1274_v17  ;;  %1460 = vmatprep.mubr.f32.mxu1 %v1282_v45 }
 0x1bd   : > { %1461 = vmatmul.mubr.f32.vlgmr.msra.gmra.mrb[0].mxu1 %v1281_v25  ;;  %v1283_v40 = vmax.f32 %v1113_v46, 0.0 }
 0x1be   : > { %v1284_v14 = vmax.f32 %v1115_v54, 0.0  ;;  %v1118_v41 = vpop.f32.mrb[12].mxu0 }
 0x1bf   : > { %v1119_v27 = vadd.f32 %v1118_v41, %v2793_v11  ;;  %v1120_v33 = vpop.f32.mrb[13].mxu0  ;;  %1441 = vmatmul.mubr.f32.vlgmr.msra.gmra.mrb[64].mxu0 %v1273_v36 }
 0x1c0   : > { %v1121_v43 = vadd.f32 %v1120_v33, %v2789_v10  ;;  %1445 = vmatprep.mubr.f32.mxu0 %v1276_v8  ;;  %1465 = vmatprep.mubr.f32.mxu1 %v1284_v14 }
 0x1c1   : > { %1466 = vmatmul.mubr.f32.gmra.mrb[2].mxu1 %v1283_v40  ;;  %v1285_v3 = vmax.f32 %v1119_v27, 0.0 }
 0x1c2   : > { %v1286_v37 = vmax.f32 %v1121_v43, 0.0  ;;  %v1124_v52 = vpop.f32.mrb[14].mxu0 }
 0x1c3   : > { %v1125_v53 = vadd.f32 %v1124_v52, %v2793_v11  ;;  %v1126_v16 = vpop.f32.mrb[15].mxu0  ;;  %1446 = vmatmul.mubr.f32.gmra.mrb[66].mxu0 %v1275_v44 }
 0x1c4   : > { %v1127_v12 = vadd.f32 %v1126_v16, %v2789_v10  ;;  %1450 = vmatprep.mubr.f32.mxu0 %v1278_v48  ;;  %1470 = vmatprep.mubr.f32.mxu1 %v1286_v37 }
 0x1c5   : > { %1471 = vmatmul.mubr.f32.gmra.mrb[4].mxu1 %v1285_v3  ;;  %v1287_v56 = vmax.f32 %v1125_v53, 0.0 }
 0x1c6   : > { %v1288_v30 = vmax.f32 %v1127_v12, 0.0  ;;  %v1130_v38 = vpop.f32.mrb[16].mxu0 }
 0x1c7   : > { %v1131_v57 = vadd.f32 %v1130_v38, %v2793_v11  ;;  %v1132_v58 = vpop.f32.mrb[17].mxu0  ;;  %1451 = vmatmul.mubr.f32.gmra.mrb[68].mxu0 %v1277_v39 }
 0x1c8   : > { %v1133_v9 = vadd.f32 %v1132_v58, %v2789_v10  ;;  %1455 = vmatprep.mubr.f32.mxu0 %v1280_v24  ;;  %1475 = vmatprep.mubr.f32.mxu1 %v1288_v30 }
 0x1c9   : > { %1476 = vmatmul.mubr.f32.gmra.mrb[6].mxu1 %v1287_v56  ;;  %v1289_v61 = vmax.f32 %v1131_v57, 0.0 }
 0x1ca   : > { %v1290_v13 = vmax.f32 %v1133_v9, 0.0  ;;  %v1136_v42 = vpop.f32.mrb[18].mxu0 }
 0x1cb   : > { %v1137_v62 = vadd.f32 %v1136_v42, %v2793_v11  ;;  %v1138_v63 = vpop.f32.mrb[19].mxu0  ;;  %1456 = vmatmul.mubr.f32.gmra.mrb[70].mxu0 %v1279_v21 }
 0x1cc   : > { %v1139_v1 = vadd.f32 %v1138_v63, %v2789_v10  ;;  %1480 = vmatprep.mubr.f32.mxu1 %v1290_v13 }
 0x1cd   : > { %1481 = vmatmul.mubr.f32.gmra.mrb[8].mxu1 %v1289_v61  ;;  %v1291_v5 = vmax.f32 %v1137_v62, 0.0 }
 0x1ce   : > { %v1292_v60 = vmax.f32 %v1139_v1, 0.0 }
 0x1d0   : > { %1485 = vmatprep.mubr.f32.mxu1 %v1292_v60 }
 0x1d1   : > { %1486 = vmatmul.mubr.f32.gmra.mrb[10].mxu1 %v1291_v5 }
 0x1d3   : > { %v1142_v47 = vpop.f32.mrb[20].mxu0 }
 0x1d4   : > { %v1143_v0 = vadd.f32 %v1142_v47, %v2793_v11  ;;  %v1144_v7 = vpop.f32.mrb[21].mxu0 }
 0x1d5   : > { %v1145_v6 = vadd.f32 %v1144_v7, %v2789_v10 }
 0x1d6   : > { %v1293_v20 = vmax.f32 %v1143_v0, 0.0 }
 0x1d7   : > { %v1294_v15 = vmax.f32 %v1145_v6, 0.0 }
 0x1d9   : > { %1490 = vmatprep.mubr.f32.mxu1 %v1294_v15 }
 0x1da   : > { %v1148_v2 = vpop.f32.mrb[22].mxu0  ;;  %1491 = vmatmul.mubr.f32.gmra.mrb[12].mxu1 %v1293_v20 }
 0x1db   : > { %v1149_v22 = vadd.f32 %v1148_v2, %v2793_v11  ;;  %v1150_v23 = vpop.f32.mrb[23].mxu0 }
 0x1dc   : > { %v1151_v26 = vadd.f32 %v1150_v23, %v2789_v10 }
 0x1dd   : > { %v1295_v19 = vmax.f32 %v1149_v22, 0.0 }
 0x1de   : > { %v1296_v28 = vmax.f32 %v1151_v26, 0.0 }
 0x1e0   : > { %1495 = vmatprep.mubr.f32.mxu1 %v1296_v28 }
 0x1e1   : > { %1496 = vmatmul.mubr.f32.gmra.mrb[14].mxu1 %v1295_v19 }
 0x1e4   : > { %v1154_v50 = vpop.f32.mrb[24].mxu0 }
 0x1e5   : > { %v1155_v4 = vadd.f32 %v1154_v50, %v2793_v11  ;;  %v1156_v29 = vpop.f32.mrb[25].mxu0 }
 0x1e6   : > { %v1157_v49 = vadd.f32 %v1156_v29, %v2789_v10 }
 0x1e7   : > { %v1297_v18 = vmax.f32 %v1155_v4, 0.0 }
 0x1e8   : > { %v1298_v17 = vmax.f32 %v1157_v49, 0.0 }
 0x1ea   : > { %1500 = vmatprep.mubr.f32.mxu1 %v1298_v17 }
 0x1eb   : > { %1501 = vmatmul.mubr.f32.gmra.mrb[16].mxu1 %v1297_v18 }
 0x1ec   : > { %v1160_v34 = vpop.f32.mrb[26].mxu0 }
 0x1ed   : > { %v1161_v45 = vadd.f32 %v1160_v34, %v2793_v11  ;;  %v1162_v25 = vpop.f32.mrb[27].mxu0 }
 0x1ee   : > { %v1163_v46 = vadd.f32 %v1162_v25, %v2789_v10 }
 0x1ef   : > { %v1299_v54 = vmax.f32 %v1161_v45, 0.0 }
 0x1f0   : > { %v1300_v35 = vmax.f32 %v1163_v46, 0.0 }
 0x1f2   : > { %1505 = vmatprep.mubr.f32.mxu1 %v1300_v35 }
 0x1f3   : > { %1506 = vmatmul.mubr.f32.gmra.mrb[18].mxu1 %v1299_v54 }
 0x1f6   : > { %v1166_v36 = vpop.f32.mrb[28].mxu0 }
 0x1f7   : > { %v1167_v59 = vadd.f32 %v1166_v36, %v2793_v11  ;;  %v1168_v8 = vpop.f32.mrb[29].mxu0 }
 0x1f8   : > { %v1169_v32 = vadd.f32 %v1168_v8, %v2789_v10 }
 0x1f9   : > { %v1301_v41 = vmax.f32 %v1167_v59, 0.0 }
 0x1fa   : > { %v1302_v14 = vmax.f32 %v1169_v32, 0.0 }
 0x1fc   : > { %1510 = vmatprep.mubr.f32.mxu1 %v1302_v14 }
 0x1fd   : > { %1511 = vmatmul.mubr.f32.gmra.mrb[20].mxu1 %v1301_v41 }
 0x200   : > { %v1172_v40 = vpop.f32.mrb[30].mxu0 }
 0x201   : > { %v1173_v27 = vadd.f32 %v1172_v40, %v2793_v11  ;;  %v1174_v33 = vpop.f32.mrb[31].mxu0 }
 0x202   : > { %v1175_v43 = vadd.f32 %v1174_v33, %v2789_v10 }
 0x203   : > { %v1303_v31 = vmax.f32 %v1173_v27, 0.0 }
 0x204   : > { %v1304_v44 = vmax.f32 %v1175_v43, 0.0 }
 0x206   : > { %1515 = vmatprep.mubr.f32.mxu1 %v1304_v44 }
 0x207   : > { %v1178_v48 = vpop.f32.mrb[32].mxu0  ;;  %1516 = vmatmul.mubr.f32.gmra.mrb[22].mxu1 %v1303_v31 }
 0x208   : > { %v1179_v51 = vadd.f32 %v1178_v48, %v2793_v11  ;;  %v1180_v37 = vpop.f32.mrb[33].mxu0 }
 0x209   : > { %v1181_v52 = vadd.f32 %v1180_v37, %v2789_v10 }
 0x20a   : > { %v1305_v53 = vmax.f32 %v1179_v51, 0.0 }
 0x20b   : > { %v1306_v3 = vmax.f32 %v1181_v52, 0.0 }
 0x20d   : > { %1520 = vmatprep.mubr.f32.mxu1 %v1306_v3 }
 0x20e   : > { %1521 = vmatmul.mubr.f32.gmra.mrb[24].mxu1 %v1305_v53 }
 0x211   : > { %v1184_v16 = vpop.f32.mrb[34].mxu0 }
 0x212   : > { %v1185_v12 = vadd.f32 %v1184_v16, %v2793_v11  ;;  %v1186_v39 = vpop.f32.mrb[35].mxu0 }
 0x213   : > { %v1187_v55 = vadd.f32 %v1186_v39, %v2789_v10 }
 0x214   : > { %v1307_v30 = vmax.f32 %v1185_v12, 0.0 }
 0x215   : > { %v1308_v24 = vmax.f32 %v1187_v55, 0.0 }
 0x217   : > { %1525 = vmatprep.mubr.f32.mxu1 %v1308_v24 }
 0x218   : > { %1526 = vmatmul.mubr.f32.gmra.mrb[26].mxu1 %v1307_v30 }
 0x219   : > { %v1190_v38 = vpop.f32.mrb[36].mxu0 }
 0x21a   : > { %v1191_v56 = vadd.f32 %v1190_v38, %v2793_v11  ;;  %v1192_v57 = vpop.f32.mrb[37].mxu0 }
 0x21b   : > { %v1193_v58 = vadd.f32 %v1192_v57, %v2789_v10 }
 0x21c   : > { %v1309_v21 = vmax.f32 %v1191_v56, 0.0 }
 0x21d   : > { %v1310_v9 = vmax.f32 %v1193_v58, 0.0 }
 0x21f   : > { %1530 = vmatprep.mubr.f32.mxu1 %v1310_v9 }
 0x220   : > { %1531 = vmatmul.mubr.f32.gmra.mrb[28].mxu1 %v1309_v21 }
 0x223   : > { %v1196_v13 = vpop.f32.mrb[38].mxu0 }
 0x224   : > { %v1197_v42 = vadd.f32 %v1196_v13, %v2793_v11  ;;  %v1198_v61 = vpop.f32.mrb[39].mxu0 }
 0x225   : > { %v1199_v62 = vadd.f32 %v1198_v61, %v2789_v10 }
 0x226   : > { %v1311_v1 = vmax.f32 %v1197_v42, 0.0 }
 0x227   : > { %v1312_v63 = vmax.f32 %v1199_v62, 0.0 }
 0x229   : > { %1535 = vmatprep.mubr.f32.mxu1 %v1312_v63 }
 0x22a   : > { %1536 = vmatmul.mubr.f32.gmra.mrb[30].mxu1 %v1311_v1 }
 0x22d   : > { %v1202_v60 = vpop.f32.mrb[40].mxu0 }
 0x22e   : > { %v1203_v5 = vadd.f32 %v1202_v60, %v2793_v11  ;;  %v1204_v47 = vpop.f32.mrb[41].mxu0 }
 0x22f   : > { %v1205_v0 = vadd.f32 %v1204_v47, %v2789_v10 }
 0x230   : > { %v1313_v6 = vmax.f32 %v1203_v5, 0.0 }
 0x231   : > { %v1314_v7 = vmax.f32 %v1205_v0, 0.0 }
 0x233   : > { %1540 = vmatprep.mubr.f32.mxu1 %v1314_v7 }
 0x234   : > { %v1208_v15 = vpop.f32.mrb[42].mxu0  ;;  %1541 = vmatmul.mubr.f32.gmra.mrb[32].mxu1 %v1313_v6  ;;  %v2870_v6 = vld [vmem:[%s2998_s6] ss:$0 sm:$0xff] }
 0x235   : > { %v1209_v20 = vadd.f32 %v1208_v15, %v2793_v11  ;;  %v1210_v2 = vpop.f32.mrb[43].mxu0 }
 0x236   : > { %v1211_v22 = vadd.f32 %v1210_v2, %v2789_v10 }
 0x237   : > { %v1315_v26 = vmax.f32 %v1209_v20, 0.0 }
 0x238   : > { %v1316_v23 = vmax.f32 %v1211_v22, 0.0 }
 0x23a   : > { %1545 = vmatprep.mubr.f32.mxu1 %v1316_v23 }
 0x23b   : > { %1546 = vmatmul.mubr.f32.gmra.mrb[34].mxu1 %v1315_v26 }
 0x23e   : > { %v1214_v28 = vpop.f32.mrb[44].mxu0 }
 0x23f   : > { %v1215_v19 = vadd.f32 %v1214_v28, %v2793_v11  ;;  %v1216_v50 = vpop.f32.mrb[45].mxu0 }
 0x240   : > { %v1217_v4 = vadd.f32 %v1216_v50, %v2789_v10 }
 0x241   : > { %v1317_v49 = vmax.f32 %v1215_v19, 0.0 }
 0x242   : > { %v1318_v29 = vmax.f32 %v1217_v4, 0.0 }
 0x244   : > { %1550 = vmatprep.mubr.f32.mxu1 %v1318_v29 }
 0x245   : > { %1551 = vmatmul.mubr.f32.gmra.mrb[36].mxu1 %v1317_v49 }
 0x246   : > { %v1220_v17 = vpop.f32.mrb[46].mxu0 }
 0x247   : > { %v1221_v18 = vadd.f32 %v1220_v17, %v2793_v11  ;;  %v1222_v34 = vpop.f32.mrb[47].mxu0 }
 0x248   : > { %v1223_v45 = vadd.f32 %v1222_v34, %v2789_v10 }
 0x249   : > { %v1319_v46 = vmax.f32 %v1221_v18, 0.0 }
 0x24a   : > { %v1320_v25 = vmax.f32 %v1223_v45, 0.0 }
 0x24c   : > { %1555 = vmatprep.mubr.f32.mxu1 %v1320_v25 }
 0x24d   : > { %1556 = vmatmul.mubr.f32.gmra.mrb[38].mxu1 %v1319_v46 }
 0x250   : > { %v1226_v35 = vpop.f32.mrb[48].mxu0 }
 0x251   : > { %v1227_v54 = vadd.f32 %v1226_v35, %v2793_v11  ;;  %v1228_v36 = vpop.f32.mrb[49].mxu0 }
 0x252   : > { %v1229_v59 = vadd.f32 %v1228_v36, %v2789_v10 }
 0x253   : > { %v1321_v32 = vmax.f32 %v1227_v54, 0.0 }
 0x254   : > { %v1322_v8 = vmax.f32 %v1229_v59, 0.0 }
 0x256   : > { %1560 = vmatprep.mubr.f32.mxu1 %v1322_v8 }
 0x257   : > { %1561 = vmatmul.mubr.f32.gmra.mrb[40].mxu1 %v1321_v32 }
 0x25a   : > { %v1232_v14 = vpop.f32.mrb[50].mxu0 }
 0x25b   : > { %v1233_v41 = vadd.f32 %v1232_v14, %v2793_v11  ;;  %v1234_v40 = vpop.f32.mrb[51].mxu0 }
 0x25c   : > { %v1235_v27 = vadd.f32 %v1234_v40, %v2789_v10 }
 0x25d   : > { %v1323_v43 = vmax.f32 %v1233_v41, 0.0 }
 0x25e   : > { %v1324_v33 = vmax.f32 %v1235_v27, 0.0 }
 0x260   : > { %1565 = vmatprep.mubr.f32.mxu1 %v1324_v33 }
 0x261   : > { %v1238_v44 = vpop.f32.mrb[52].mxu0  ;;  %1566 = vmatmul.mubr.f32.gmra.mrb[42].mxu1 %v1323_v43 }
 0x262   : > { %v1239_v31 = vadd.f32 %v1238_v44, %v2793_v11  ;;  %v1240_v48 = vpop.f32.mrb[53].mxu0 }
 0x263   : > { %v1241_v51 = vadd.f32 %v1240_v48, %v2789_v10 }
 0x264   : > { %v1325_v52 = vmax.f32 %v1239_v31, 0.0 }
 0x265   : > { %v1326_v37 = vmax.f32 %v1241_v51, 0.0 }
 0x267   : > { %1570 = vmatprep.mubr.f32.mxu1 %v1326_v37 }
 0x268   : > { %1571 = vmatmul.mubr.f32.gmra.mrb[44].mxu1 %v1325_v52 }
 0x26b   : > { %v1244_v3 = vpop.f32.mrb[54].mxu0 }
 0x26c   : > { %v1245_v53 = vadd.f32 %v1244_v3, %v2793_v11  ;;  %v1246_v16 = vpop.f32.mrb[55].mxu0 }
 0x26d   : > { %v1247_v12 = vadd.f32 %v1246_v16, %v2789_v10 }
 0x26e   : > { %v1327_v55 = vmax.f32 %v1245_v53, 0.0 }
 0x26f   : > { %v1328_v39 = vmax.f32 %v1247_v12, 0.0 }
 0x271   : > { %1575 = vmatprep.mubr.f32.mxu1 %v1328_v39 }
 0x272   : > { %1576 = vmatmul.mubr.f32.gmra.mrb[46].mxu1 %v1327_v55 }
 0x273   : > { %v1250_v24 = vpop.f32.mrb[56].mxu0 }
 0x274   : > { %v1251_v30 = vadd.f32 %v1250_v24, %v2793_v11  ;;  %v1252_v38 = vpop.f32.mrb[57].mxu0 }
 0x275   : > { %v1253_v56 = vadd.f32 %v1252_v38, %v2789_v10 }
 0x276   : > { %v1329_v58 = vmax.f32 %v1251_v30, 0.0 }
 0x277   : > { %v1330_v57 = vmax.f32 %v1253_v56, 0.0 }
 0x279   : > { %1580 = vmatprep.mubr.f32.mxu1 %v1330_v57 }
 0x27a   : > { %1581 = vmatmul.mubr.f32.gmra.mrb[48].mxu1 %v1329_v58 }
 0x27d   : > { %v1256_v9 = vpop.f32.mrb[58].mxu0 }
 0x27e   : > { %v1257_v21 = vadd.f32 %v1256_v9, %v2793_v11  ;;  %v1258_v13 = vpop.f32.mrb[59].mxu0 }
 0x27f   : > { %v1259_v42 = vadd.f32 %v1258_v13, %v2789_v10 }
 0x280   : > { %v1331_v62 = vmax.f32 %v1257_v21, 0.0 }
 0x281   : > { %v1332_v61 = vmax.f32 %v1259_v42, 0.0 }
 0x283   : > { %1585 = vmatprep.mubr.f32.mxu1 %v1332_v61 }
 0x284   : > { %1586 = vmatmul.mubr.f32.gmra.mrb[50].mxu1 %v1331_v62 }
 0x287   : > { %v1262_v63 = vpop.f32.mrb[60].mxu0 }
 0x288   : > { %v1263_v1 = vadd.f32 %v1262_v63, %v2793_v11  ;;  %v1264_v60 = vpop.f32.mrb[61].mxu0 }
 0x289   : > { %v1265_v5 = vadd.f32 %v1264_v60, %v2789_v10 }
 0x28a   : > { %v1333_v0 = vmax.f32 %v1263_v1, 0.0 }
 0x28b   : > { %v1334_v47 = vmax.f32 %v1265_v5, 0.0 }
 0x28d   : > { %1590 = vmatprep.mubr.f32.mxu1 %v1334_v47 }
 0x28e   : > { %v1268_v7 = vpop.f32.mrb[62].mxu0  ;;  %1591 = vmatmul.mubr.f32.gmra.mrb[52].mxu1 %v1333_v0 }
 0x28f   : > { %v1269_v15 = vadd.f32 %v1268_v7, %v2793_v11  ;;  %v1270_v20 = vpop.f32.mrb[63].mxu0 }
 0x290   : > { %v1271_v2 = vadd.f32 %v1270_v20, %v2789_v10  ;;  %v1462_v22 = vpop.f32.mrb[0].mxu1 }
 0x291   : > { %v1463_v23 = vadd.f32 %v2870_v6, %v1462_v22  ;;  %v1464_v26 = vpop.f32.mrb[1].mxu1  ;;  %v1335_v50 = vmax.f32 %v1269_v15, 0.0 }
 0x292   : > { %v1336_v28 = vmax.f32 %v1271_v2, 0.0  ;;  %v1442_v19 = vpop.f32.mrb[64].mxu0 }
 0x293   : > { %1605 = vst [vmem:[%s2875_s21 + $0x20] sm:$0xff] %v1463_v23  ;;  %v1443_v4 = vadd.f32 %v2870_v6, %v1442_v19  ;;  %v1444_v11 = vpop.f32.mrb[65].mxu0 }
 0x294   : > { %v1467_v29 = vpop.f32.mrb[2].mxu1  ;;  %1595 = vmatprep.mubr.f32.mxu1 %v1336_v28 }
 0x295   : > { %1601 = vst [vmem:[%s2875_s21] sm:$0xff] %v1443_v4  ;;  %v1468_v10 = vadd.f32 %v2870_v6, %v1467_v29  ;;  %v1469_v49 = vpop.f32.mrb[3].mxu1  ;;  %1596 = vmatmul.mubr.f32.gmra.mrb[54].mxu1 %v1335_v50 }
 0x296   : > { %v1447_v17 = vpop.f32.mrb[66].mxu0 }
 0x297   : > { %1606 = vst [vmem:[%s2875_s21 + $0x28] sm:$0xff] %v1468_v10  ;;  %v1448_v18 = vadd.f32 %v2870_v6, %v1447_v17  ;;  %v1449_v34 = vpop.f32.mrb[67].mxu0 }
 0x298   : > { %v1472_v45 = vpop.f32.mrb[4].mxu1 }
 0x299   : > { %1602 = vst [vmem:[%s2875_s21 + $0x8] sm:$0xff] %v1448_v18  ;;  %v1473_v25 = vadd.f32 %v2870_v6, %v1472_v45  ;;  %v1474_v46 = vpop.f32.mrb[5].mxu1 }
 0x29a   : > { %v1452_v35 = vpop.f32.mrb[68].mxu0 }
 0x29b   : > { %1607 = vst [vmem:[%s2875_s21 + $0x30] sm:$0xff] %v1473_v25  ;;  %v1453_v54 = vadd.f32 %v2870_v6, %v1452_v35  ;;  %v1454_v36 = vpop.f32.mrb[69].mxu0 }
 0x29c   : > { %v1477_v59 = vpop.f32.mrb[6].mxu1 }
 0x29d   : > { %1603 = vst [vmem:[%s2875_s21 + $0x10] sm:$0xff] %v1453_v54  ;;  %v1478_v8 = vadd.f32 %v2870_v6, %v1477_v59  ;;  %v1479_v32 = vpop.f32.mrb[7].mxu1 }
 0x29e   : > { %v1457_v14 = vpop.f32.mrb[70].mxu0 }
 0x29f   : > { %1608 = vst [vmem:[%s2875_s21 + $0x38] sm:$0xff] %v1478_v8  ;;  %v1458_v41 = vadd.f32 %v2870_v6, %v1457_v14  ;;  %v1459_v40 = vpop.f32.mrb[71].mxu0 }
 0x2a0   : > { %v1482_v27 = vpop.f32.mrb[8].mxu1 }
 0x2a1   : > { %1604 = vst [vmem:[%s2875_s21 + $0x18] sm:$0xff] %v1458_v41  ;;  %v1483_v33 = vadd.f32 %v2870_v6, %v1482_v27  ;;  %v1484_v43 = vpop.f32.mrb[9].mxu1 }
 0x2a3   : > { %1609 = vst [vmem:[%s2875_s21 + $0x40] sm:$0xff] %v1483_v33 }
 0x2a4   : > { %v1487_v44 = vpop.f32.mrb[10].mxu1 }
 0x2a5   : > { %v1488_v31 = vadd.f32 %v2870_v6, %v1487_v44  ;;  %v1489_v48 = vpop.f32.mrb[11].mxu1 }
 0x2a7   : > { %1610 = vst [vmem:[%s2875_s21 + $0x48] sm:$0xff] %v1488_v31 }
 0x2ad   : > { %v1492_v51 = vpop.f32.mrb[12].mxu1 }
 0x2ae   : > { %v1493_v37 = vadd.f32 %v2870_v6, %v1492_v51  ;;  %v1494_v52 = vpop.f32.mrb[13].mxu1 }
 0x2b0   : > { %1611 = vst [vmem:[%s2875_s21 + $0x50] sm:$0xff] %v1493_v37 }
 0x2b4   : > { %v1497_v3 = vpop.f32.mrb[14].mxu1 }
 0x2b5   : > { %v1498_v53 = vadd.f32 %v2870_v6, %v1497_v3  ;;  %v1499_v16 = vpop.f32.mrb[15].mxu1 }
 0x2b7   : > { %1612 = vst [vmem:[%s2875_s21 + $0x58] sm:$0xff] %v1498_v53 }
 0x2be   : > { %v1502_v12 = vpop.f32.mrb[16].mxu1 }
 0x2bf   : > { %v1503_v39 = vadd.f32 %v2870_v6, %v1502_v12  ;;  %v1504_v55 = vpop.f32.mrb[17].mxu1 }
 0x2c1   : > { %1613 = vst [vmem:[%s2875_s21 + $0x60] sm:$0xff] %v1503_v39 }
 0x2c6   : > { %v1507_v24 = vpop.f32.mrb[18].mxu1 }
 0x2c7   : > { %v1508_v30 = vadd.f32 %v2870_v6, %v1507_v24  ;;  %v1509_v38 = vpop.f32.mrb[19].mxu1 }
 0x2c9   : > { %1614 = vst [vmem:[%s2875_s21 + $0x68] sm:$0xff] %v1508_v30 }
 0x2d0   : > { %v1512_v56 = vpop.f32.mrb[20].mxu1 }
 0x2d1   : > { %v1513_v57 = vadd.f32 %v2870_v6, %v1512_v56  ;;  %v1514_v58 = vpop.f32.mrb[21].mxu1 }
 0x2d3   : > { %1615 = vst [vmem:[%s2875_s21 + $0x70] sm:$0xff] %v1513_v57 }
 0x2da   : > { %v1517_v9 = vpop.f32.mrb[22].mxu1 }
 0x2db   : > { %v1518_v21 = vadd.f32 %v2870_v6, %v1517_v9  ;;  %v1519_v13 = vpop.f32.mrb[23].mxu1 }
 0x2dd   : > { %1616 = vst [vmem:[%s2875_s21 + $0x78] sm:$0xff] %v1518_v21 }
 0x2e1   : > { %v1522_v42 = vpop.f32.mrb[24].mxu1 }
 0x2e2   : > { %v1523_v61 = vadd.f32 %v2870_v6, %v1522_v42  ;;  %v1524_v62 = vpop.f32.mrb[25].mxu1 }
 0x2e4   : > { %1617 = vst [vmem:[%s2875_s21 + $0x80] sm:$0xff] %v1523_v61 }
 0x2eb   : > { %v1527_v63 = vpop.f32.mrb[26].mxu1 }
 0x2ec   : > { %v1528_v1 = vadd.f32 %v2870_v6, %v1527_v63  ;;  %v1529_v60 = vpop.f32.mrb[27].mxu1 }
 0x2ee   : > { %1618 = vst [vmem:[%s2875_s21 + $0x88] sm:$0xff] %v1528_v1 }
 0x2f3   : > { %v1532_v5 = vpop.f32.mrb[28].mxu1 }
 0x2f4   : > { %v1533_v47 = vadd.f32 %v2870_v6, %v1532_v5  ;;  %v1534_v0 = vpop.f32.mrb[29].mxu1 }
 0x2f6   : > { %1619 = vst [vmem:[%s2875_s21 + $0x90] sm:$0xff] %v1533_v47 }
 0x2fd   : > { %v1537_v7 = vpop.f32.mrb[30].mxu1 }
 0x2fe   : > { %v1538_v15 = vadd.f32 %v2870_v6, %v1537_v7  ;;  %v1539_v20 = vpop.f32.mrb[31].mxu1 }
 0x300   : > { %1620 = vst [vmem:[%s2875_s21 + $0x98] sm:$0xff] %v1538_v15 }
 0x307   : > { %v1542_v2 = vpop.f32.mrb[32].mxu1 }
 0x308   : > { %v1543_v22 = vadd.f32 %v2870_v6, %v1542_v2  ;;  %v1544_v23 = vpop.f32.mrb[33].mxu1 }
 0x30a   : > { %1621 = vst [vmem:[%s2875_s21 + $0xa0] sm:$0xff] %v1543_v22 }
 0x30e   : > { %v1547_v26 = vpop.f32.mrb[34].mxu1 }
 0x30f   : > { %v1548_v28 = vadd.f32 %v2870_v6, %v1547_v26  ;;  %v1549_v19 = vpop.f32.mrb[35].mxu1 }
 0x311   : > { %1622 = vst [vmem:[%s2875_s21 + $0xa8] sm:$0xff] %v1548_v28 }
 0x318   : > { %v1552_v50 = vpop.f32.mrb[36].mxu1 }
 0x319   : > { %v1553_v4 = vadd.f32 %v2870_v6, %v1552_v50  ;;  %v1554_v11 = vpop.f32.mrb[37].mxu1 }
 0x31b   : > { %1623 = vst [vmem:[%s2875_s21 + $0xb0] sm:$0xff] %v1553_v4 }
 0x320   : > { %v1557_v29 = vpop.f32.mrb[38].mxu1 }
 0x321   : > { %v1558_v10 = vadd.f32 %v2870_v6, %v1557_v29  ;;  %v1559_v49 = vpop.f32.mrb[39].mxu1 }
 0x323   : > { %1624 = vst [vmem:[%s2875_s21 + $0xb8] sm:$0xff] %v1558_v10 }
 0x32a   : > { %v1562_v17 = vpop.f32.mrb[40].mxu1 }
 0x32b   : > { %v1563_v18 = vadd.f32 %v2870_v6, %v1562_v17  ;;  %v1564_v34 = vpop.f32.mrb[41].mxu1 }
 0x32d   : > { %1625 = vst [vmem:[%s2875_s21 + $0xc0] sm:$0xff] %v1563_v18 }
 0x334   : > { %v1567_v45 = vpop.f32.mrb[42].mxu1 }
 0x335   : > { %v1568_v25 = vadd.f32 %v2870_v6, %v1567_v45  ;;  %v1569_v46 = vpop.f32.mrb[43].mxu1 }
 0x337   : > { %1626 = vst [vmem:[%s2875_s21 + $0xc8] sm:$0xff] %v1568_v25 }
 0x33b   : > { %v1572_v35 = vpop.f32.mrb[44].mxu1 }
 0x33c   : > { %v1573_v54 = vadd.f32 %v2870_v6, %v1572_v35  ;;  %v1574_v36 = vpop.f32.mrb[45].mxu1 }
 0x33e   : > { %1627 = vst [vmem:[%s2875_s21 + $0xd0] sm:$0xff] %v1573_v54 }
 0x345   : > { %v1577_v59 = vpop.f32.mrb[46].mxu1 }
 0x346   : > { %v1578_v8 = vadd.f32 %v2870_v6, %v1577_v59  ;;  %v1579_v32 = vpop.f32.mrb[47].mxu1 }
 0x348   : > { %1628 = vst [vmem:[%s2875_s21 + $0xd8] sm:$0xff] %v1578_v8 }
 0x34d   : > { %v1582_v14 = vpop.f32.mrb[48].mxu1 }
 0x34e   : > { %v1583_v41 = vadd.f32 %v2870_v6, %v1582_v14  ;;  %v1584_v40 = vpop.f32.mrb[49].mxu1 }
 0x350   : > { %1629 = vst [vmem:[%s2875_s21 + $0xe0] sm:$0xff] %v1583_v41 }
 0x357   : > { %v1587_v27 = vpop.f32.mrb[50].mxu1 }
 0x358   : > { %v1588_v33 = vadd.f32 %v2870_v6, %v1587_v27  ;;  %v1589_v43 = vpop.f32.mrb[51].mxu1 }
 0x35a   : > { %1630 = vst [vmem:[%s2875_s21 + $0xe8] sm:$0xff] %v1588_v33 }
 0x361   : > { %v1592_v44 = vpop.f32.mrb[52].mxu1 }
 0x362   : > { %v1593_v31 = vadd.f32 %v2870_v6, %v1592_v44  ;;  %v1594_v48 = vpop.f32.mrb[53].mxu1 }
 0x364   : > { %1631 = vst [vmem:[%s2875_s21 + $0xf0] sm:$0xff] %v1593_v31 }
 0x368   : > { %v1597_v51 = vpop.f32.mrb[54].mxu1 }
 0x369   : > { %v1598_v37 = vadd.f32 %v2870_v6, %v1597_v51  ;;  %v1599_v52 = vpop.f32.mrb[55].mxu1 }
 0x36b   : > { %1632 = vst [vmem:[%s2875_s21 + $0xf8] sm:$0xff] %v1598_v37 }
 0x36c   : > { %1963 = shalt.err (!%p1960_p3)
}
 0x36d   : > { %s1964_s18 = scalar_lea.hbm %s2943_s14, 4096  ;;  %s1968_s20 = scalar_lea.hbm %s2999_s7, 32768 }
 0x36e   : > { %p1965_p4 = scmp.ne.s32.totalorder %s2943_s14, %s1964_s18  ;;  %p1969_p9 = scmp.lt.u32.totalorder %s2943_s14, %s2999_s7 }
 0x36f   : > { %p1970_p10 = scmp.lt.u32.totalorder %s1968_s20, %s1964_s18  ;;  %p1972_p12 = scmp.lt.u32.totalorder %s1964_s18, %s2943_s14 }
 0x370   : > { %p1966_p7 = pnand %p1965_p4, %p2100_p5 }
 0x371   : > { %p1971_p11 = por %p1970_p10, %p1969_p9 }
 0x372   : > { %p1967_p8 = pneg %p1966_p7 }
 0x373   : > { %p1973_p13 = por %p1972_p12, %p1971_p11 }
 0x375   : > { %p1974_p0 = pnand %p1973_p13, %p1967_p8 }
 0x377   : > { %1977 = shalt.err (!%p1974_p0)
}
 0x378   : > { %s2020_s8 = smov 128   ;;  %s2021_s9 = smov 8  }
 0x379   : > { %1836 = dma.vmem_to_hbm [thread:$0]  (%p2100_p5), %s2945_s23, 4096, %s2943_s14, %s2951_s15, %s2020_s8, %s2020_s8, %s2021_s9  }
 0x37a PF: > { %p1842_p1 = scmp.ge.s32.totalorder %s2012_s27, 2  ;;  %s1662_s28 = sand.u32 1, %s2000_s24  }
 0x37b   : > { %s1663_s13 = scalar_lea.sflag [#allocation3], %s1662_s28 }
 0x37c   : > { %p1839_p2 = pnand %p1842_p1, %p2104_p6 }
 0x37e   : > { %1995 = dma.done.wait (!%p1839_p2), %s1663_s13, 4096  }
 0x37f   : > { %1997 = vsyncadd (!%p1839_p2), %s1663_s13, 4294963200  ;;  %p17_p3 = scmp.ge.s32.totalorder %s2087_s30, 10   ;;  %s3002_s24 = smov %s2004_s25 }
 0x380   : > { %s3003_s25 = smov %s2008_s26  ;;  %s3004_s26 = smov %s2098_s10 }
 0x381   : > { %s3005_s27 = smov %s2087_s30  ;;  %19 = sbr.rel (!%p17_p3) target bundleno = 3 (0x3), region = 83 }
 0x388   :  { %1668 = vsyncpa [#allocation3], 1 }
 0x389   :  { %1670 = vsyncpa [#allocation3 + $0x1], 1 }

</bundles_post_ra>
